<compile_context>
chip_gen: v5e
topology: v5e:2x2
jax: 0.10.0
libtpu: 0.0.40
codegen_flags: <defaults>
</compile_context>

<pallas_src>
import math

import jax
import jax.numpy as jnp
from jax.experimental import pallas as pl
from jax.experimental.pallas import tpu as pltpu

# ---------------- small synthetic config (RoBERTa-base scaled down) ----------------
B, S = 2, 8            # batch, sequence length
H = 32                 # hidden size
NUM_HEADS = 4
HEAD_DIM = H // NUM_HEADS
INTER = 64             # FFN intermediate size
N_LAYERS = 2
VOCAB = 50
MAX_POS = 16
LN_EPS = 1e-5
PAD_IDX = 1            # RoBERTa padding_idx (position ids start at PAD_IDX + 1)


# ---------------- in-kernel helpers (pure jnp, traced inside the single kernel) -----
def _layernorm(x, g, b):
    mu = jnp.mean(x, axis=-1, keepdims=True)
    var = jnp.mean((x - mu) ** 2, axis=-1, keepdims=True)
    return (x - mu) * jax.lax.rsqrt(var + LN_EPS) * g + b


def _gelu(x):
    # TODO(synk): HF RoBERTa uses erf-GELU; tanh approximation keeps EUP-only math.
    c = math.sqrt(2.0 / math.pi)
    return 0.5 * x * (1.0 + jnp.tanh(c * (x + 0.044715 * x * x * x)))


def _encoder_layer(h, mask_bias, wqkv, bqkv, wo, bo,
                   ln1g, ln1b, w1, b1, w2, b2, ln2g, ln2b):
    # h: (B*S, H); mask_bias: (B, 1, S)
    scale = 1.0 / math.sqrt(HEAD_DIM)

    # fused QKV projection: one (B*S, H) x (H, 3H) matmul instead of three
    qkv = jnp.dot(h, wqkv, preferred_element_type=jnp.float32) + bqkv     # (B*S, 3H)

    ctx_heads = []
    for hh in range(NUM_HEADS):                                           # static unroll
        lo = hh * HEAD_DIM
        q = qkv[:, lo:lo + HEAD_DIM].reshape(B, S, HEAD_DIM)
        k = qkv[:, H + lo:H + lo + HEAD_DIM].reshape(B, S, HEAD_DIM)
        v = qkv[:, 2 * H + lo:2 * H + lo + HEAD_DIM].reshape(B, S, HEAD_DIM)

        s = jnp.einsum('bqd,bkd->bqk', q, k,
                       preferred_element_type=jnp.float32) * scale        # (B, S, S)
        s = s + mask_bias
        m = jnp.max(s, axis=-1, keepdims=True)
        p = jnp.exp(s - m)
        p = p / jnp.sum(p, axis=-1, keepdims=True)
        ctx_heads.append(jnp.einsum('bqk,bkd->bqd', p, v,
                                    preferred_element_type=jnp.float32))  # (B, S, hd)

    ctx = jnp.concatenate(ctx_heads, axis=-1).reshape(B * S, H)           # (B*S, H)

    attn_out = jnp.dot(ctx, wo, preferred_element_type=jnp.float32) + bo
    h = _layernorm(attn_out + h, ln1g, ln1b)                              # LN epilogue

    ffn = _gelu(jnp.dot(h, w1, preferred_element_type=jnp.float32) + b1)
    ffn = jnp.dot(ffn, w2, preferred_element_type=jnp.float32) + b2
    return _layernorm(ffn + h, ln2g, ln2b)                                # LN epilogue


# ---------------- the single fused Pallas kernel ----------------
def codebert_kernel(emb_ref, mask_ref, eg_ref, eb_ref,
                    wqkv_ref, bqkv_ref, wo_ref, bo_ref,
                    ln1g_ref, ln1b_ref, w1_ref, b1_ref, w2_ref, b2_ref,
                    ln2g_ref, ln2b_ref, wp_ref, bp_ref, out_ref):
    # embedding LayerNorm (no residual -> no wasted zeros buffer / vadd)
    h = _layernorm(emb_ref[...], eg_ref[...], eb_ref[...])                # (B*S, H)

    # additive attention-mask bias computed in-kernel from the raw (B, S) mask
    mask_bias = ((1.0 - mask_ref[...]) * -1e9)[:, None, :]                # (B, 1, S)

    # statically unrolled layer loop; stacked weights stay resident in VMEM
    for l in range(N_LAYERS):
        h = _encoder_layer(h, mask_bias,
                           wqkv_ref[l], bqkv_ref[l], wo_ref[l], bo_ref[l],
                           ln1g_ref[l], ln1b_ref[l], w1_ref[l], b1_ref[l],
                           w2_ref[l], b2_ref[l], ln2g_ref[l], ln2b_ref[l])

    # pooler_output = tanh(W_p @ h[:, 0] + b_p), then row-wise L2 normalize
    cls = h.reshape(B, S, H)[:, 0, :]                                     # (B, H)
    pooled = jnp.tanh(jnp.dot(cls, wp_ref[...],
                              preferred_element_type=jnp.float32) + bp_ref[...])
    nrm = jnp.sqrt(jnp.sum(pooled * pooled, axis=-1, keepdims=True))
    # matches torch.nn.functional.normalize(p=2, dim=1, eps=1e-12)
    out_ref[...] = pooled / jnp.maximum(nrm, 1e-12)


def codebert_fused(emb, mask, params):
    return pl.pallas_call(
        codebert_kernel,
        out_shape=jax.ShapeDtypeStruct((B, H), jnp.float32),
        compiler_params=pltpu.CompilerParams(vmem_limit_bytes=32 * 1024 * 1024),
    )(emb, mask,
      params["emb_ln_g"], params["emb_ln_b"],
      params["wqkv"], params["bqkv"], params["wo"], params["bo"],
      params["ln1_g"], params["ln1_b"], params["w1"], params["b1"],
      params["w2"], params["b2"], params["ln2_g"], params["ln2_b"],
      params["wp"], params["bp"])


# ---------------- deterministic parameter init (stacked per-layer weights) ----------
def init_params(key):
    keys = iter(jax.random.split(key, 256))

    def nrm(shape, scale=0.02):
        return scale * jax.random.normal(next(keys), shape, dtype=jnp.float32)

    p = {
        "word_emb": nrm((VOCAB, H)),
        "pos_emb": nrm((MAX_POS, H)),
        "type_emb": nrm((1, H)),
        "emb_ln_g": jnp.ones((1, H), jnp.float32),
        "emb_ln_b": jnp.zeros((1, H), jnp.float32),
        "wp": nrm((H, H)),
        "bp": jnp.zeros((1, H), jnp.float32),
    }
    wqkv, bqkv, wo, bo = [], [], [], []
    ln1g, ln1b, w1, b1, w2, b2, ln2g, ln2b = [], [], [], [], [], [], [], []
    for _ in range(N_LAYERS):
        wq, wk, wv = nrm((H, H)), nrm((H, H)), nrm((H, H))
        wqkv.append(jnp.concatenate([wq, wk, wv], axis=1))       # (H, 3H)
        bqkv.append(jnp.zeros((1, 3 * H), jnp.float32))
        wo.append(nrm((H, H)))
        bo.append(jnp.zeros((1, H), jnp.float32))
        ln1g.append(jnp.ones((1, H), jnp.float32))
        ln1b.append(jnp.zeros((1, H), jnp.float32))
        w1.append(nrm((H, INTER)))
        b1.append(jnp.zeros((1, INTER), jnp.float32))
        w2.append(nrm((INTER, H)))
        b2.append(jnp.zeros((1, H), jnp.float32))
        ln2g.append(jnp.ones((1, H), jnp.float32))
        ln2b.append(jnp.zeros((1, H), jnp.float32))
    p.update({
        "wqkv": jnp.stack(wqkv), "bqkv": jnp.stack(bqkv),
        "wo": jnp.stack(wo), "bo": jnp.stack(bo),
        "ln1_g": jnp.stack(ln1g), "ln1_b": jnp.stack(ln1b),
        "w1": jnp.stack(w1), "b1": jnp.stack(b1),
        "w2": jnp.stack(w2), "b2": jnp.stack(b2),
        "ln2_g": jnp.stack(ln2g), "ln2_b": jnp.stack(ln2b),
    })
    return p


# ---------------- forward pass (CodeBERT.forward semantics) ----------------
@jax.jit
def codebert_forward(params, input_ids, attention_mask):
    # embedding lookups are table-gather glue; everything downstream is one Pallas kernel
    mask_i = attention_mask.astype(jnp.int32)
    # RoBERTa-style position ids: cumsum over non-pad tokens, offset by padding_idx
    pos_ids = jnp.cumsum(mask_i, axis=1) * mask_i + PAD_IDX
    emb = (jnp.take(params["word_emb"], input_ids, axis=0)
           + jnp.take(params["pos_emb"], pos_ids, axis=0)
           + params["type_emb"][0][None, None, :])
    emb = emb.reshape(B * S, H).astype(jnp.float32)
    return codebert_fused(emb, attention_mask.astype(jnp.float32), params)


if __name__ == "__main__":
    key = jax.random.PRNGKey(0)
    kp, ki = jax.random.split(key)
    params = init_params(kp)

    input_ids = jax.random.randint(ki, (B, S), 0, VOCAB, dtype=jnp.int32)
    attention_mask = jnp.ones((B, S), dtype=jnp.float32)

    out = codebert_forward(params, input_ids, attention_mask)
    out = jax.block_until_ready(out)
    assert out.shape == (B, H) and out.dtype == jnp.float32
    # rows are unit-norm
    assert bool(jnp.allclose(jnp.linalg.norm(out, axis=-1), 1.0, atol=1e-5))
    print("KERNEL_OK")
</pallas_src>

<mosaic_0001>
module attributes {stable_mosaic.version = 11 : i64} {
  func.func @codebert_kernel(%arg0: memref<16x32xf32, #tpu.memory_space<vmem>>, %arg1: memref<2x8xf32, #tpu.memory_space<vmem>>, %arg2: memref<1x32xf32, #tpu.memory_space<vmem>>, %arg3: memref<1x32xf32, #tpu.memory_space<vmem>>, %arg4: memref<2x32x96xf32, #tpu.memory_space<vmem>>, %arg5: memref<2x1x96xf32, #tpu.memory_space<vmem>>, %arg6: memref<2x32x32xf32, #tpu.memory_space<vmem>>, %arg7: memref<2x1x32xf32, #tpu.memory_space<vmem>>, %arg8: memref<2x1x32xf32, #tpu.memory_space<vmem>>, %arg9: memref<2x1x32xf32, #tpu.memory_space<vmem>>, %arg10: memref<2x32x64xf32, #tpu.memory_space<vmem>>, %arg11: memref<2x1x64xf32, #tpu.memory_space<vmem>>, %arg12: memref<2x64x32xf32, #tpu.memory_space<vmem>>, %arg13: memref<2x1x32xf32, #tpu.memory_space<vmem>>, %arg14: memref<2x1x32xf32, #tpu.memory_space<vmem>>, %arg15: memref<2x1x32xf32, #tpu.memory_space<vmem>>, %arg16: memref<32x32xf32, #tpu.memory_space<vmem>>, %arg17: memref<1x32xf32, #tpu.memory_space<vmem>>, %arg18: memref<2x32xf32, #tpu.memory_space<vmem>>) attributes {dimension_semantics = [], scalar_prefetch = 0 : i64, scratch_operands = 0 : i64, tpu.core_type = #tpu.core_type<tc>} {
    %c0 = arith.constant 0 : index
    %c0_0 = arith.constant 0 : index
    %0 = vector.load %arg0[%c0, %c0_0] : memref<16x32xf32, #tpu.memory_space<vmem>>, vector<16x32xf32>
    %c0_1 = arith.constant 0 : index
    %c0_2 = arith.constant 0 : index
    %1 = vector.load %arg2[%c0_1, %c0_2] : memref<1x32xf32, #tpu.memory_space<vmem>>, vector<1x32xf32>
    %c0_3 = arith.constant 0 : index
    %c0_4 = arith.constant 0 : index
    %2 = vector.load %arg3[%c0_3, %c0_4] : memref<1x32xf32, #tpu.memory_space<vmem>>, vector<1x32xf32>
    %cst = arith.constant dense<0.000000e+00> : vector<16xf32>
    %3 = vector.multi_reduction <add>, %0, %cst [1] : vector<16x32xf32> to vector<16xf32>
    %4 = vector.shape_cast %3 : vector<16xf32> to vector<16x1xf32>
    %cst_5 = arith.constant 3.200000e+01 : f32
    %5 = vector.broadcast %cst_5 : f32 to vector<16x1xf32>
    %6 = arith.divf %4, %5 : vector<16x1xf32>
    %7 = vector.broadcast %6 : vector<16x1xf32> to vector<16x32xf32>
    %8 = arith.subf %0, %7 : vector<16x32xf32>
    %9 = arith.mulf %8, %8 : vector<16x32xf32>
    %cst_6 = arith.constant dense<0.000000e+00> : vector<16xf32>
    %10 = vector.multi_reduction <add>, %9, %cst_6 [1] : vector<16x32xf32> to vector<16xf32>
    %11 = vector.shape_cast %10 : vector<16xf32> to vector<16x1xf32>
    %cst_7 = arith.constant 3.200000e+01 : f32
    %12 = vector.broadcast %cst_7 : f32 to vector<16x1xf32>
    %13 = arith.divf %11, %12 : vector<16x1xf32>
    %14 = vector.broadcast %6 : vector<16x1xf32> to vector<16x32xf32>
    %15 = arith.subf %0, %14 : vector<16x32xf32>
    %cst_8 = arith.constant 9.99999974E-6 : f32
    %16 = vector.broadcast %cst_8 : f32 to vector<16x1xf32>
    %17 = arith.addf %13, %16 : vector<16x1xf32>
    %18 = math.rsqrt %17 : vector<16x1xf32>
    %19 = vector.broadcast %18 : vector<16x1xf32> to vector<16x32xf32>
    %20 = arith.mulf %15, %19 : vector<16x32xf32>
    %21 = vector.broadcast %1 : vector<1x32xf32> to vector<16x32xf32>
    %22 = arith.mulf %20, %21 : vector<16x32xf32>
    %23 = vector.broadcast %2 : vector<1x32xf32> to vector<16x32xf32>
    %24 = arith.addf %22, %23 : vector<16x32xf32>
    %c0_9 = arith.constant 0 : index
    %c0_10 = arith.constant 0 : index
    %25 = vector.load %arg1[%c0_9, %c0_10] : memref<2x8xf32, #tpu.memory_space<vmem>>, vector<2x8xf32>
    %cst_11 = arith.constant 1.000000e+00 : f32
    %26 = vector.broadcast %cst_11 : f32 to vector<2x8xf32>
    %27 = arith.subf %26, %25 : vector<2x8xf32>
    %cst_12 = arith.constant -1.000000e+09 : f32
    %28 = vector.broadcast %cst_12 : f32 to vector<2x8xf32>
    %29 = arith.mulf %27, %28 : vector<2x8xf32>
    %30 = vector.shape_cast %29 : vector<2x8xf32> to vector<2x1x8xf32>
    %c0_13 = arith.constant 0 : index
    %c0_14 = arith.constant 0 : index
    %c0_15 = arith.constant 0 : index
    %31 = vector.load %arg4[%c0_13, %c0_14, %c0_15] : memref<2x32x96xf32, #tpu.memory_space<vmem>>, vector<1x32x96xf32>
    %32 = vector.shape_cast %31 : vector<1x32x96xf32> to vector<32x96xf32>
    %c0_16 = arith.constant 0 : index
    %c0_17 = arith.constant 0 : index
    %c0_18 = arith.constant 0 : index
    %33 = vector.load %arg5[%c0_16, %c0_17, %c0_18] : memref<2x1x96xf32, #tpu.memory_space<vmem>>, vector<1x1x96xf32>
    %34 = vector.shape_cast %33 : vector<1x1x96xf32> to vector<1x96xf32>
    %c0_19 = arith.constant 0 : index
    %c0_20 = arith.constant 0 : index
    %c0_21 = arith.constant 0 : index
    %35 = vector.load %arg6[%c0_19, %c0_20, %c0_21] : memref<2x32x32xf32, #tpu.memory_space<vmem>>, vector<1x32x32xf32>
    %36 = vector.shape_cast %35 : vector<1x32x32xf32> to vector<32x32xf32>
    %c0_22 = arith.constant 0 : index
    %c0_23 = arith.constant 0 : index
    %c0_24 = arith.constant 0 : index
    %37 = vector.load %arg7[%c0_22, %c0_23, %c0_24] : memref<2x1x32xf32, #tpu.memory_space<vmem>>, vector<1x1x32xf32>
    %38 = vector.shape_cast %37 : vector<1x1x32xf32> to vector<1x32xf32>
    %c0_25 = arith.constant 0 : index
    %c0_26 = arith.constant 0 : index
    %c0_27 = arith.constant 0 : index
    %39 = vector.load %arg8[%c0_25, %c0_26, %c0_27] : memref<2x1x32xf32, #tpu.memory_space<vmem>>, vector<1x1x32xf32>
    %40 = vector.shape_cast %39 : vector<1x1x32xf32> to vector<1x32xf32>
    %c0_28 = arith.constant 0 : index
    %c0_29 = arith.constant 0 : index
    %c0_30 = arith.constant 0 : index
    %41 = vector.load %arg9[%c0_28, %c0_29, %c0_30] : memref<2x1x32xf32, #tpu.memory_space<vmem>>, vector<1x1x32xf32>
    %42 = vector.shape_cast %41 : vector<1x1x32xf32> to vector<1x32xf32>
    %c0_31 = arith.constant 0 : index
    %c0_32 = arith.constant 0 : index
    %c0_33 = arith.constant 0 : index
    %43 = vector.load %arg10[%c0_31, %c0_32, %c0_33] : memref<2x32x64xf32, #tpu.memory_space<vmem>>, vector<1x32x64xf32>
    %44 = vector.shape_cast %43 : vector<1x32x64xf32> to vector<32x64xf32>
    %c0_34 = arith.constant 0 : index
    %c0_35 = arith.constant 0 : index
    %c0_36 = arith.constant 0 : index
    %45 = vector.load %arg11[%c0_34, %c0_35, %c0_36] : memref<2x1x64xf32, #tpu.memory_space<vmem>>, vector<1x1x64xf32>
    %46 = vector.shape_cast %45 : vector<1x1x64xf32> to vector<1x64xf32>
    %c0_37 = arith.constant 0 : index
    %c0_38 = arith.constant 0 : index
    %c0_39 = arith.constant 0 : index
    %47 = vector.load %arg12[%c0_37, %c0_38, %c0_39] : memref<2x64x32xf32, #tpu.memory_space<vmem>>, vector<1x64x32xf32>
    %48 = vector.shape_cast %47 : vector<1x64x32xf32> to vector<64x32xf32>
    %c0_40 = arith.constant 0 : index
    %c0_41 = arith.constant 0 : index
    %c0_42 = arith.constant 0 : index
    %49 = vector.load %arg13[%c0_40, %c0_41, %c0_42] : memref<2x1x32xf32, #tpu.memory_space<vmem>>, vector<1x1x32xf32>
    %50 = vector.shape_cast %49 : vector<1x1x32xf32> to vector<1x32xf32>
    %c0_43 = arith.constant 0 : index
    %c0_44 = arith.constant 0 : index
    %c0_45 = arith.constant 0 : index
    %51 = vector.load %arg14[%c0_43, %c0_44, %c0_45] : memref<2x1x32xf32, #tpu.memory_space<vmem>>, vector<1x1x32xf32>
    %52 = vector.shape_cast %51 : vector<1x1x32xf32> to vector<1x32xf32>
    %c0_46 = arith.constant 0 : index
    %c0_47 = arith.constant 0 : index
    %c0_48 = arith.constant 0 : index
    %53 = vector.load %arg15[%c0_46, %c0_47, %c0_48] : memref<2x1x32xf32, #tpu.memory_space<vmem>>, vector<1x1x32xf32>
    %54 = vector.shape_cast %53 : vector<1x1x32xf32> to vector<1x32xf32>
    %cst_49 = arith.constant dense<0.000000e+00> : vector<16x96xf32>
    %55 = tpu.matmul %24, %32, %cst_49 {dimension_numbers = #tpu.dot_dimension_numbers<[1], [0], [0], [1], [0, 0, 1, 1], [], []>} : vector<16x32xf32>, vector<32x96xf32>, vector<16x96xf32> -> vector<16x96xf32>
    %56 = vector.broadcast %34 : vector<1x96xf32> to vector<16x96xf32>
    %57 = arith.addf %55, %56 : vector<16x96xf32>
    %58 = vector.extract_strided_slice %57 {offsets = [0, 0], sizes = [16, 8], strides = [1, 1]} : vector<16x96xf32> to vector<16x8xf32>
    %59 = vector.shape_cast %58 : vector<16x8xf32> to vector<2x8x8xf32>
    %60 = vector.extract_strided_slice %57 {offsets = [0, 32], sizes = [16, 8], strides = [1, 1]} : vector<16x96xf32> to vector<16x8xf32>
    %61 = vector.shape_cast %60 : vector<16x8xf32> to vector<2x8x8xf32>
    %62 = vector.extract_strided_slice %57 {offsets = [0, 64], sizes = [16, 8], strides = [1, 1]} : vector<16x96xf32> to vector<16x8xf32>
    %63 = vector.shape_cast %62 : vector<16x8xf32> to vector<2x8x8xf32>
    "tpu.trace_start"() <{level = 10 : i32, message = "bqd,bkd->bqk"}> : () -> ()
    %cst_50 = arith.constant dense<0.000000e+00> : vector<2x8x8xf32>
    %64 = tpu.matmul %59, %61, %cst_50 {dimension_numbers = #tpu.dot_dimension_numbers<[2], [2], [1], [1], [0, 0, 0, 1, 1, 1], [0], [0]>} : vector<2x8x8xf32>, vector<2x8x8xf32>, vector<2x8x8xf32> -> vector<2x8x8xf32>
    "tpu.trace_stop"() : () -> ()
    %cst_51 = arith.constant 0.353553385 : f32
    %65 = vector.broadcast %cst_51 : f32 to vector<2x8x8xf32>
    %66 = arith.mulf %64, %65 : vector<2x8x8xf32>
    %67 = vector.broadcast %30 : vector<2x1x8xf32> to vector<2x8x8xf32>
    %68 = arith.addf %66, %67 : vector<2x8x8xf32>
    %cst_52 = arith.constant dense<0xFF800000> : vector<2x8xf32>
    %69 = vector.multi_reduction <maximumf>, %68, %cst_52 [2] : vector<2x8x8xf32> to vector<2x8xf32>
    %70 = vector.shape_cast %69 : vector<2x8xf32> to vector<2x8x1xf32>
    %71 = vector.broadcast %70 : vector<2x8x1xf32> to vector<2x8x8xf32>
    %72 = arith.subf %68, %71 : vector<2x8x8xf32>
    %73 = math.exp %72 : vector<2x8x8xf32>
    %cst_53 = arith.constant dense<0.000000e+00> : vector<2x8xf32>
    %74 = vector.multi_reduction <add>, %73, %cst_53 [2] : vector<2x8x8xf32> to vector<2x8xf32>
    %75 = vector.shape_cast %74 : vector<2x8xf32> to vector<2x8x1xf32>
    %76 = vector.broadcast %75 : vector<2x8x1xf32> to vector<2x8x8xf32>
    %77 = arith.divf %73, %76 : vector<2x8x8xf32>
    "tpu.trace_start"() <{level = 10 : i32, message = "bqk,bkd->bqd"}> : () -> ()
    %cst_54 = arith.constant dense<0.000000e+00> : vector<2x8x8xf32>
    %78 = tpu.matmul %77, %63, %cst_54 {dimension_numbers = #tpu.dot_dimension_numbers<[2], [1], [1], [2], [0, 0, 0, 1, 1, 2], [0], [0]>} : vector<2x8x8xf32>, vector<2x8x8xf32>, vector<2x8x8xf32> -> vector<2x8x8xf32>
    "tpu.trace_stop"() : () -> ()
    %79 = vector.extract_strided_slice %57 {offsets = [0, 8], sizes = [16, 8], strides = [1, 1]} : vector<16x96xf32> to vector<16x8xf32>
    %80 = vector.shape_cast %79 : vector<16x8xf32> to vector<2x8x8xf32>
    %81 = vector.extract_strided_slice %57 {offsets = [0, 40], sizes = [16, 8], strides = [1, 1]} : vector<16x96xf32> to vector<16x8xf32>
    %82 = vector.shape_cast %81 : vector<16x8xf32> to vector<2x8x8xf32>
    %83 = vector.extract_strided_slice %57 {offsets = [0, 72], sizes = [16, 8], strides = [1, 1]} : vector<16x96xf32> to vector<16x8xf32>
    %84 = vector.shape_cast %83 : vector<16x8xf32> to vector<2x8x8xf32>
    "tpu.trace_start"() <{level = 10 : i32, message = "bqd,bkd->bqk"}> : () -> ()
    %cst_55 = arith.constant dense<0.000000e+00> : vector<2x8x8xf32>
    %85 = tpu.matmul %80, %82, %cst_55 {dimension_numbers = #tpu.dot_dimension_numbers<[2], [2], [1], [1], [0, 0, 0, 1, 1, 1], [0], [0]>} : vector<2x8x8xf32>, vector<2x8x8xf32>, vector<2x8x8xf32> -> vector<2x8x8xf32>
    "tpu.trace_stop"() : () -> ()
    %cst_56 = arith.constant 0.353553385 : f32
    %86 = vector.broadcast %cst_56 : f32 to vector<2x8x8xf32>
    %87 = arith.mulf %85, %86 : vector<2x8x8xf32>
    %88 = vector.broadcast %30 : vector<2x1x8xf32> to vector<2x8x8xf32>
    %89 = arith.addf %87, %88 : vector<2x8x8xf32>
    %cst_57 = arith.constant dense<0xFF800000> : vector<2x8xf32>
    %90 = vector.multi_reduction <maximumf>, %89, %cst_57 [2] : vector<2x8x8xf32> to vector<2x8xf32>
    %91 = vector.shape_cast %90 : vector<2x8xf32> to vector<2x8x1xf32>
    %92 = vector.broadcast %91 : vector<2x8x1xf32> to vector<2x8x8xf32>
    %93 = arith.subf %89, %92 : vector<2x8x8xf32>
    %94 = math.exp %93 : vector<2x8x8xf32>
    %cst_58 = arith.constant dense<0.000000e+00> : vector<2x8xf32>
    %95 = vector.multi_reduction <add>, %94, %cst_58 [2] : vector<2x8x8xf32> to vector<2x8xf32>
    %96 = vector.shape_cast %95 : vector<2x8xf32> to vector<2x8x1xf32>
    %97 = vector.broadcast %96 : vector<2x8x1xf32> to vector<2x8x8xf32>
    %98 = arith.divf %94, %97 : vector<2x8x8xf32>
    "tpu.trace_start"() <{level = 10 : i32, message = "bqk,bkd->bqd"}> : () -> ()
    %cst_59 = arith.constant dense<0.000000e+00> : vector<2x8x8xf32>
    %99 = tpu.matmul %98, %84, %cst_59 {dimension_numbers = #tpu.dot_dimension_numbers<[2], [1], [1], [2], [0, 0, 0, 1, 1, 2], [0], [0]>} : vector<2x8x8xf32>, vector<2x8x8xf32>, vector<2x8x8xf32> -> vector<2x8x8xf32>
    "tpu.trace_stop"() : () -> ()
    %100 = vector.extract_strided_slice %57 {offsets = [0, 16], sizes = [16, 8], strides = [1, 1]} : vector<16x96xf32> to vector<16x8xf32>
    %101 = vector.shape_cast %100 : vector<16x8xf32> to vector<2x8x8xf32>
    %102 = vector.extract_strided_slice %57 {offsets = [0, 48], sizes = [16, 8], strides = [1, 1]} : vector<16x96xf32> to vector<16x8xf32>
    %103 = vector.shape_cast %102 : vector<16x8xf32> to vector<2x8x8xf32>
    %104 = vector.extract_strided_slice %57 {offsets = [0, 80], sizes = [16, 8], strides = [1, 1]} : vector<16x96xf32> to vector<16x8xf32>
    %105 = vector.shape_cast %104 : vector<16x8xf32> to vector<2x8x8xf32>
    "tpu.trace_start"() <{level = 10 : i32, message = "bqd,bkd->bqk"}> : () -> ()
    %cst_60 = arith.constant dense<0.000000e+00> : vector<2x8x8xf32>
    %106 = tpu.matmul %101, %103, %cst_60 {dimension_numbers = #tpu.dot_dimension_numbers<[2], [2], [1], [1], [0, 0, 0, 1, 1, 1], [0], [0]>} : vector<2x8x8xf32>, vector<2x8x8xf32>, vector<2x8x8xf32> -> vector<2x8x8xf32>
    "tpu.trace_stop"() : () -> ()
    %cst_61 = arith.constant 0.353553385 : f32
    %107 = vector.broadcast %cst_61 : f32 to vector<2x8x8xf32>
    %108 = arith.mulf %106, %107 : vector<2x8x8xf32>
    %109 = vector.broadcast %30 : vector<2x1x8xf32> to vector<2x8x8xf32>
    %110 = arith.addf %108, %109 : vector<2x8x8xf32>
    %cst_62 = arith.constant dense<0xFF800000> : vector<2x8xf32>
    %111 = vector.multi_reduction <maximumf>, %110, %cst_62 [2] : vector<2x8x8xf32> to vector<2x8xf32>
    %112 = vector.shape_cast %111 : vector<2x8xf32> to vector<2x8x1xf32>
    %113 = vector.broadcast %112 : vector<2x8x1xf32> to vector<2x8x8xf32>
    %114 = arith.subf %110, %113 : vector<2x8x8xf32>
    %115 = math.exp %114 : vector<2x8x8xf32>
    %cst_63 = arith.constant dense<0.000000e+00> : vector<2x8xf32>
    %116 = vector.multi_reduction <add>, %115, %cst_63 [2] : vector<2x8x8xf32> to vector<2x8xf32>
    %117 = vector.shape_cast %116 : vector<2x8xf32> to vector<2x8x1xf32>
    %118 = vector.broadcast %117 : vector<2x8x1xf32> to vector<2x8x8xf32>
    %119 = arith.divf %115, %118 : vector<2x8x8xf32>
    "tpu.trace_start"() <{level = 10 : i32, message = "bqk,bkd->bqd"}> : () -> ()
    %cst_64 = arith.constant dense<0.000000e+00> : vector<2x8x8xf32>
    %120 = tpu.matmul %119, %105, %cst_64 {dimension_numbers = #tpu.dot_dimension_numbers<[2], [1], [1], [2], [0, 0, 0, 1, 1, 2], [0], [0]>} : vector<2x8x8xf32>, vector<2x8x8xf32>, vector<2x8x8xf32> -> vector<2x8x8xf32>
    "tpu.trace_stop"() : () -> ()
    %121 = vector.extract_strided_slice %57 {offsets = [0, 24], sizes = [16, 8], strides = [1, 1]} : vector<16x96xf32> to vector<16x8xf32>
    %122 = vector.shape_cast %121 : vector<16x8xf32> to vector<2x8x8xf32>
    %123 = vector.extract_strided_slice %57 {offsets = [0, 56], sizes = [16, 8], strides = [1, 1]} : vector<16x96xf32> to vector<16x8xf32>
    %124 = vector.shape_cast %123 : vector<16x8xf32> to vector<2x8x8xf32>
    %125 = vector.extract_strided_slice %57 {offsets = [0, 88], sizes = [16, 8], strides = [1, 1]} : vector<16x96xf32> to vector<16x8xf32>
    %126 = vector.shape_cast %125 : vector<16x8xf32> to vector<2x8x8xf32>
    "tpu.trace_start"() <{level = 10 : i32, message = "bqd,bkd->bqk"}> : () -> ()
    %cst_65 = arith.constant dense<0.000000e+00> : vector<2x8x8xf32>
    %127 = tpu.matmul %122, %124, %cst_65 {dimension_numbers = #tpu.dot_dimension_numbers<[2], [2], [1], [1], [0, 0, 0, 1, 1, 1], [0], [0]>} : vector<2x8x8xf32>, vector<2x8x8xf32>, vector<2x8x8xf32> -> vector<2x8x8xf32>
    "tpu.trace_stop"() : () -> ()
    %cst_66 = arith.constant 0.353553385 : f32
    %128 = vector.broadcast %cst_66 : f32 to vector<2x8x8xf32>
    %129 = arith.mulf %127, %128 : vector<2x8x8xf32>
    %130 = vector.broadcast %30 : vector<2x1x8xf32> to vector<2x8x8xf32>
    %131 = arith.addf %129, %130 : vector<2x8x8xf32>
    %cst_67 = arith.constant dense<0xFF800000> : vector<2x8xf32>
    %132 = vector.multi_reduction <maximumf>, %131, %cst_67 [2] : vector<2x8x8xf32> to vector<2x8xf32>
    %133 = vector.shape_cast %132 : vector<2x8xf32> to vector<2x8x1xf32>
    %134 = vector.broadcast %133 : vector<2x8x1xf32> to vector<2x8x8xf32>
    %135 = arith.subf %131, %134 : vector<2x8x8xf32>
    %136 = math.exp %135 : vector<2x8x8xf32>
    %cst_68 = arith.constant dense<0.000000e+00> : vector<2x8xf32>
    %137 = vector.multi_reduction <add>, %136, %cst_68 [2] : vector<2x8x8xf32> to vector<2x8xf32>
    %138 = vector.shape_cast %137 : vector<2x8xf32> to vector<2x8x1xf32>
    %139 = vector.broadcast %138 : vector<2x8x1xf32> to vector<2x8x8xf32>
    %140 = arith.divf %136, %139 : vector<2x8x8xf32>
    "tpu.trace_start"() <{level = 10 : i32, message = "bqk,bkd->bqd"}> : () -> ()
    %cst_69 = arith.constant dense<0.000000e+00> : vector<2x8x8xf32>
    %141 = tpu.matmul %140, %126, %cst_69 {dimension_numbers = #tpu.dot_dimension_numbers<[2], [1], [1], [2], [0, 0, 0, 1, 1, 2], [0], [0]>} : vector<2x8x8xf32>, vector<2x8x8xf32>, vector<2x8x8xf32> -> vector<2x8x8xf32>
    "tpu.trace_stop"() : () -> ()
    %142 = tpu.concatenate %78, %99, %120, %141 in 2 : vector<2x8x8xf32>, vector<2x8x8xf32>, vector<2x8x8xf32>, vector<2x8x8xf32> -> vector<2x8x32xf32>
    %143 = vector.shape_cast %142 : vector<2x8x32xf32> to vector<16x32xf32>
    %cst_70 = arith.constant dense<0.000000e+00> : vector<16x32xf32>
    %144 = tpu.matmul %143, %36, %cst_70 {dimension_numbers = #tpu.dot_dimension_numbers<[1], [0], [0], [1], [0, 0, 1, 1], [], []>} : vector<16x32xf32>, vector<32x32xf32>, vector<16x32xf32> -> vector<16x32xf32>
    %145 = vector.broadcast %38 : vector<1x32xf32> to vector<16x32xf32>
    %146 = arith.addf %144, %145 : vector<16x32xf32>
    %147 = arith.addf %146, %24 : vector<16x32xf32>
    %cst_71 = arith.constant dense<0.000000e+00> : vector<16xf32>
    %148 = vector.multi_reduction <add>, %147, %cst_71 [1] : vector<16x32xf32> to vector<16xf32>
    %149 = vector.shape_cast %148 : vector<16xf32> to vector<16x1xf32>
    %cst_72 = arith.constant 3.200000e+01 : f32
    %150 = vector.broadcast %cst_72 : f32 to vector<16x1xf32>
    %151 = arith.divf %149, %150 : vector<16x1xf32>
    %152 = vector.broadcast %151 : vector<16x1xf32> to vector<16x32xf32>
    %153 = arith.subf %147, %152 : vector<16x32xf32>
    %154 = arith.mulf %153, %153 : vector<16x32xf32>
    %cst_73 = arith.constant dense<0.000000e+00> : vector<16xf32>
    %155 = vector.multi_reduction <add>, %154, %cst_73 [1] : vector<16x32xf32> to vector<16xf32>
    %156 = vector.shape_cast %155 : vector<16xf32> to vector<16x1xf32>
    %cst_74 = arith.constant 3.200000e+01 : f32
    %157 = vector.broadcast %cst_74 : f32 to vector<16x1xf32>
    %158 = arith.divf %156, %157 : vector<16x1xf32>
    %159 = vector.broadcast %151 : vector<16x1xf32> to vector<16x32xf32>
    %160 = arith.subf %147, %159 : vector<16x32xf32>
    %cst_75 = arith.constant 9.99999974E-6 : f32
    %161 = vector.broadcast %cst_75 : f32 to vector<16x1xf32>
    %162 = arith.addf %158, %161 : vector<16x1xf32>
    %163 = math.rsqrt %162 : vector<16x1xf32>
    %164 = vector.broadcast %163 : vector<16x1xf32> to vector<16x32xf32>
    %165 = arith.mulf %160, %164 : vector<16x32xf32>
    %166 = vector.broadcast %40 : vector<1x32xf32> to vector<16x32xf32>
    %167 = arith.mulf %165, %166 : vector<16x32xf32>
    %168 = vector.broadcast %42 : vector<1x32xf32> to vector<16x32xf32>
    %169 = arith.addf %167, %168 : vector<16x32xf32>
    %cst_76 = arith.constant dense<0.000000e+00> : vector<16x64xf32>
    %170 = tpu.matmul %169, %44, %cst_76 {dimension_numbers = #tpu.dot_dimension_numbers<[1], [0], [0], [1], [0, 0, 1, 1], [], []>} : vector<16x32xf32>, vector<32x64xf32>, vector<16x64xf32> -> vector<16x64xf32>
    %171 = vector.broadcast %46 : vector<1x64xf32> to vector<16x64xf32>
    %172 = arith.addf %170, %171 : vector<16x64xf32>
    %cst_77 = arith.constant 5.000000e-01 : f32
    %173 = vector.broadcast %cst_77 : f32 to vector<16x64xf32>
    %174 = arith.mulf %173, %172 : vector<16x64xf32>
    %cst_78 = arith.constant 4.471500e-02 : f32
    %175 = vector.broadcast %cst_78 : f32 to vector<16x64xf32>
    %176 = arith.mulf %175, %172 : vector<16x64xf32>
    %177 = arith.mulf %176, %172 : vector<16x64xf32>
    %178 = arith.mulf %177, %172 : vector<16x64xf32>
    %179 = arith.addf %172, %178 : vector<16x64xf32>
    %cst_79 = arith.constant 0.797884583 : f32
    %180 = vector.broadcast %cst_79 : f32 to vector<16x64xf32>
    %181 = arith.mulf %180, %179 : vector<16x64xf32>
    %182 = math.tanh %181 : vector<16x64xf32>
    %cst_80 = arith.constant 1.000000e+00 : f32
    %183 = vector.broadcast %cst_80 : f32 to vector<16x64xf32>
    %184 = arith.addf %183, %182 : vector<16x64xf32>
    %185 = arith.mulf %174, %184 : vector<16x64xf32>
    %cst_81 = arith.constant dense<0.000000e+00> : vector<16x32xf32>
    %186 = tpu.matmul %185, %48, %cst_81 {dimension_numbers = #tpu.dot_dimension_numbers<[1], [0], [0], [1], [0, 0, 1, 1], [], []>} : vector<16x64xf32>, vector<64x32xf32>, vector<16x32xf32> -> vector<16x32xf32>
    %187 = vector.broadcast %50 : vector<1x32xf32> to vector<16x32xf32>
    %188 = arith.addf %186, %187 : vector<16x32xf32>
    %189 = arith.addf %188, %169 : vector<16x32xf32>
    %cst_82 = arith.constant dense<0.000000e+00> : vector<16xf32>
    %190 = vector.multi_reduction <add>, %189, %cst_82 [1] : vector<16x32xf32> to vector<16xf32>
    %191 = vector.shape_cast %190 : vector<16xf32> to vector<16x1xf32>
    %cst_83 = arith.constant 3.200000e+01 : f32
    %192 = vector.broadcast %cst_83 : f32 to vector<16x1xf32>
    %193 = arith.divf %191, %192 : vector<16x1xf32>
    %194 = vector.broadcast %193 : vector<16x1xf32> to vector<16x32xf32>
    %195 = arith.subf %189, %194 : vector<16x32xf32>
    %196 = arith.mulf %195, %195 : vector<16x32xf32>
    %cst_84 = arith.constant dense<0.000000e+00> : vector<16xf32>
    %197 = vector.multi_reduction <add>, %196, %cst_84 [1] : vector<16x32xf32> to vector<16xf32>
    %198 = vector.shape_cast %197 : vector<16xf32> to vector<16x1xf32>
    %cst_85 = arith.constant 3.200000e+01 : f32
    %199 = vector.broadcast %cst_85 : f32 to vector<16x1xf32>
    %200 = arith.divf %198, %199 : vector<16x1xf32>
    %201 = vector.broadcast %193 : vector<16x1xf32> to vector<16x32xf32>
    %202 = arith.subf %189, %201 : vector<16x32xf32>
    %cst_86 = arith.constant 9.99999974E-6 : f32
    %203 = vector.broadcast %cst_86 : f32 to vector<16x1xf32>
    %204 = arith.addf %200, %203 : vector<16x1xf32>
    %205 = math.rsqrt %204 : vector<16x1xf32>
    %206 = vector.broadcast %205 : vector<16x1xf32> to vector<16x32xf32>
    %207 = arith.mulf %202, %206 : vector<16x32xf32>
    %208 = vector.broadcast %52 : vector<1x32xf32> to vector<16x32xf32>
    %209 = arith.mulf %207, %208 : vector<16x32xf32>
    %210 = vector.broadcast %54 : vector<1x32xf32> to vector<16x32xf32>
    %211 = arith.addf %209, %210 : vector<16x32xf32>
    %c1 = arith.constant 1 : index
    %c0_87 = arith.constant 0 : index
    %c0_88 = arith.constant 0 : index
    %212 = vector.load %arg4[%c1, %c0_87, %c0_88] : memref<2x32x96xf32, #tpu.memory_space<vmem>>, vector<1x32x96xf32>
    %213 = vector.shape_cast %212 : vector<1x32x96xf32> to vector<32x96xf32>
    %c1_89 = arith.constant 1 : index
    %c0_90 = arith.constant 0 : index
    %c0_91 = arith.constant 0 : index
    %214 = vector.load %arg5[%c1_89, %c0_90, %c0_91] : memref<2x1x96xf32, #tpu.memory_space<vmem>>, vector<1x1x96xf32>
    %215 = vector.shape_cast %214 : vector<1x1x96xf32> to vector<1x96xf32>
    %c1_92 = arith.constant 1 : index
    %c0_93 = arith.constant 0 : index
    %c0_94 = arith.constant 0 : index
    %216 = vector.load %arg6[%c1_92, %c0_93, %c0_94] : memref<2x32x32xf32, #tpu.memory_space<vmem>>, vector<1x32x32xf32>
    %217 = vector.shape_cast %216 : vector<1x32x32xf32> to vector<32x32xf32>
    %c1_95 = arith.constant 1 : index
    %c0_96 = arith.constant 0 : index
    %c0_97 = arith.constant 0 : index
    %218 = vector.load %arg7[%c1_95, %c0_96, %c0_97] : memref<2x1x32xf32, #tpu.memory_space<vmem>>, vector<1x1x32xf32>
    %219 = vector.shape_cast %218 : vector<1x1x32xf32> to vector<1x32xf32>
    %c1_98 = arith.constant 1 : index
    %c0_99 = arith.constant 0 : index
    %c0_100 = arith.constant 0 : index
    %220 = vector.load %arg8[%c1_98, %c0_99, %c0_100] : memref<2x1x32xf32, #tpu.memory_space<vmem>>, vector<1x1x32xf32>
    %221 = vector.shape_cast %220 : vector<1x1x32xf32> to vector<1x32xf32>
    %c1_101 = arith.constant 1 : index
    %c0_102 = arith.constant 0 : index
    %c0_103 = arith.constant 0 : index
    %222 = vector.load %arg9[%c1_101, %c0_102, %c0_103] : memref<2x1x32xf32, #tpu.memory_space<vmem>>, vector<1x1x32xf32>
    %223 = vector.shape_cast %222 : vector<1x1x32xf32> to vector<1x32xf32>
    %c1_104 = arith.constant 1 : index
    %c0_105 = arith.constant 0 : index
    %c0_106 = arith.constant 0 : index
    %224 = vector.load %arg10[%c1_104, %c0_105, %c0_106] : memref<2x32x64xf32, #tpu.memory_space<vmem>>, vector<1x32x64xf32>
    %225 = vector.shape_cast %224 : vector<1x32x64xf32> to vector<32x64xf32>
    %c1_107 = arith.constant 1 : index
    %c0_108 = arith.constant 0 : index
    %c0_109 = arith.constant 0 : index
    %226 = vector.load %arg11[%c1_107, %c0_108, %c0_109] : memref<2x1x64xf32, #tpu.memory_space<vmem>>, vector<1x1x64xf32>
    %227 = vector.shape_cast %226 : vector<1x1x64xf32> to vector<1x64xf32>
    %c1_110 = arith.constant 1 : index
    %c0_111 = arith.constant 0 : index
    %c0_112 = arith.constant 0 : index
    %228 = vector.load %arg12[%c1_110, %c0_111, %c0_112] : memref<2x64x32xf32, #tpu.memory_space<vmem>>, vector<1x64x32xf32>
    %229 = vector.shape_cast %228 : vector<1x64x32xf32> to vector<64x32xf32>
    %c1_113 = arith.constant 1 : index
    %c0_114 = arith.constant 0 : index
    %c0_115 = arith.constant 0 : index
    %230 = vector.load %arg13[%c1_113, %c0_114, %c0_115] : memref<2x1x32xf32, #tpu.memory_space<vmem>>, vector<1x1x32xf32>
    %231 = vector.shape_cast %230 : vector<1x1x32xf32> to vector<1x32xf32>
    %c1_116 = arith.constant 1 : index
    %c0_117 = arith.constant 0 : index
    %c0_118 = arith.constant 0 : index
    %232 = vector.load %arg14[%c1_116, %c0_117, %c0_118] : memref<2x1x32xf32, #tpu.memory_space<vmem>>, vector<1x1x32xf32>
    %233 = vector.shape_cast %232 : vector<1x1x32xf32> to vector<1x32xf32>
    %c1_119 = arith.constant 1 : index
    %c0_120 = arith.constant 0 : index
    %c0_121 = arith.constant 0 : index
    %234 = vector.load %arg15[%c1_119, %c0_120, %c0_121] : memref<2x1x32xf32, #tpu.memory_space<vmem>>, vector<1x1x32xf32>
    %235 = vector.shape_cast %234 : vector<1x1x32xf32> to vector<1x32xf32>
    %cst_122 = arith.constant dense<0.000000e+00> : vector<16x96xf32>
    %236 = tpu.matmul %211, %213, %cst_122 {dimension_numbers = #tpu.dot_dimension_numbers<[1], [0], [0], [1], [0, 0, 1, 1], [], []>} : vector<16x32xf32>, vector<32x96xf32>, vector<16x96xf32> -> vector<16x96xf32>
    %237 = vector.broadcast %215 : vector<1x96xf32> to vector<16x96xf32>
    %238 = arith.addf %236, %237 : vector<16x96xf32>
    %239 = vector.extract_strided_slice %238 {offsets = [0, 0], sizes = [16, 8], strides = [1, 1]} : vector<16x96xf32> to vector<16x8xf32>
    %240 = vector.shape_cast %239 : vector<16x8xf32> to vector<2x8x8xf32>
    %241 = vector.extract_strided_slice %238 {offsets = [0, 32], sizes = [16, 8], strides = [1, 1]} : vector<16x96xf32> to vector<16x8xf32>
    %242 = vector.shape_cast %241 : vector<16x8xf32> to vector<2x8x8xf32>
    %243 = vector.extract_strided_slice %238 {offsets = [0, 64], sizes = [16, 8], strides = [1, 1]} : vector<16x96xf32> to vector<16x8xf32>
    %244 = vector.shape_cast %243 : vector<16x8xf32> to vector<2x8x8xf32>
    "tpu.trace_start"() <{level = 10 : i32, message = "bqd,bkd->bqk"}> : () -> ()
    %cst_123 = arith.constant dense<0.000000e+00> : vector<2x8x8xf32>
    %245 = tpu.matmul %240, %242, %cst_123 {dimension_numbers = #tpu.dot_dimension_numbers<[2], [2], [1], [1], [0, 0, 0, 1, 1, 1], [0], [0]>} : vector<2x8x8xf32>, vector<2x8x8xf32>, vector<2x8x8xf32> -> vector<2x8x8xf32>
    "tpu.trace_stop"() : () -> ()
    %cst_124 = arith.constant 0.353553385 : f32
    %246 = vector.broadcast %cst_124 : f32 to vector<2x8x8xf32>
    %247 = arith.mulf %245, %246 : vector<2x8x8xf32>
    %248 = vector.broadcast %30 : vector<2x1x8xf32> to vector<2x8x8xf32>
    %249 = arith.addf %247, %248 : vector<2x8x8xf32>
    %cst_125 = arith.constant dense<0xFF800000> : vector<2x8xf32>
    %250 = vector.multi_reduction <maximumf>, %249, %cst_125 [2] : vector<2x8x8xf32> to vector<2x8xf32>
    %251 = vector.shape_cast %250 : vector<2x8xf32> to vector<2x8x1xf32>
    %252 = vector.broadcast %251 : vector<2x8x1xf32> to vector<2x8x8xf32>
    %253 = arith.subf %249, %252 : vector<2x8x8xf32>
    %254 = math.exp %253 : vector<2x8x8xf32>
    %cst_126 = arith.constant dense<0.000000e+00> : vector<2x8xf32>
    %255 = vector.multi_reduction <add>, %254, %cst_126 [2] : vector<2x8x8xf32> to vector<2x8xf32>
    %256 = vector.shape_cast %255 : vector<2x8xf32> to vector<2x8x1xf32>
    %257 = vector.broadcast %256 : vector<2x8x1xf32> to vector<2x8x8xf32>
    %258 = arith.divf %254, %257 : vector<2x8x8xf32>
    "tpu.trace_start"() <{level = 10 : i32, message = "bqk,bkd->bqd"}> : () -> ()
    %cst_127 = arith.constant dense<0.000000e+00> : vector<2x8x8xf32>
    %259 = tpu.matmul %258, %244, %cst_127 {dimension_numbers = #tpu.dot_dimension_numbers<[2], [1], [1], [2], [0, 0, 0, 1, 1, 2], [0], [0]>} : vector<2x8x8xf32>, vector<2x8x8xf32>, vector<2x8x8xf32> -> vector<2x8x8xf32>
    "tpu.trace_stop"() : () -> ()
    %260 = vector.extract_strided_slice %238 {offsets = [0, 8], sizes = [16, 8], strides = [1, 1]} : vector<16x96xf32> to vector<16x8xf32>
    %261 = vector.shape_cast %260 : vector<16x8xf32> to vector<2x8x8xf32>
    %262 = vector.extract_strided_slice %238 {offsets = [0, 40], sizes = [16, 8], strides = [1, 1]} : vector<16x96xf32> to vector<16x8xf32>
    %263 = vector.shape_cast %262 : vector<16x8xf32> to vector<2x8x8xf32>
    %264 = vector.extract_strided_slice %238 {offsets = [0, 72], sizes = [16, 8], strides = [1, 1]} : vector<16x96xf32> to vector<16x8xf32>
    %265 = vector.shape_cast %264 : vector<16x8xf32> to vector<2x8x8xf32>
    "tpu.trace_start"() <{level = 10 : i32, message = "bqd,bkd->bqk"}> : () -> ()
    %cst_128 = arith.constant dense<0.000000e+00> : vector<2x8x8xf32>
    %266 = tpu.matmul %261, %263, %cst_128 {dimension_numbers = #tpu.dot_dimension_numbers<[2], [2], [1], [1], [0, 0, 0, 1, 1, 1], [0], [0]>} : vector<2x8x8xf32>, vector<2x8x8xf32>, vector<2x8x8xf32> -> vector<2x8x8xf32>
    "tpu.trace_stop"() : () -> ()
    %cst_129 = arith.constant 0.353553385 : f32
    %267 = vector.broadcast %cst_129 : f32 to vector<2x8x8xf32>
    %268 = arith.mulf %266, %267 : vector<2x8x8xf32>
    %269 = vector.broadcast %30 : vector<2x1x8xf32> to vector<2x8x8xf32>
    %270 = arith.addf %268, %269 : vector<2x8x8xf32>
    %cst_130 = arith.constant dense<0xFF800000> : vector<2x8xf32>
    %271 = vector.multi_reduction <maximumf>, %270, %cst_130 [2] : vector<2x8x8xf32> to vector<2x8xf32>
    %272 = vector.shape_cast %271 : vector<2x8xf32> to vector<2x8x1xf32>
    %273 = vector.broadcast %272 : vector<2x8x1xf32> to vector<2x8x8xf32>
    %274 = arith.subf %270, %273 : vector<2x8x8xf32>
    %275 = math.exp %274 : vector<2x8x8xf32>
    %cst_131 = arith.constant dense<0.000000e+00> : vector<2x8xf32>
    %276 = vector.multi_reduction <add>, %275, %cst_131 [2] : vector<2x8x8xf32> to vector<2x8xf32>
    %277 = vector.shape_cast %276 : vector<2x8xf32> to vector<2x8x1xf32>
    %278 = vector.broadcast %277 : vector<2x8x1xf32> to vector<2x8x8xf32>
    %279 = arith.divf %275, %278 : vector<2x8x8xf32>
    "tpu.trace_start"() <{level = 10 : i32, message = "bqk,bkd->bqd"}> : () -> ()
    %cst_132 = arith.constant dense<0.000000e+00> : vector<2x8x8xf32>
    %280 = tpu.matmul %279, %265, %cst_132 {dimension_numbers = #tpu.dot_dimension_numbers<[2], [1], [1], [2], [0, 0, 0, 1, 1, 2], [0], [0]>} : vector<2x8x8xf32>, vector<2x8x8xf32>, vector<2x8x8xf32> -> vector<2x8x8xf32>
    "tpu.trace_stop"() : () -> ()
    %281 = vector.extract_strided_slice %238 {offsets = [0, 16], sizes = [16, 8], strides = [1, 1]} : vector<16x96xf32> to vector<16x8xf32>
    %282 = vector.shape_cast %281 : vector<16x8xf32> to vector<2x8x8xf32>
    %283 = vector.extract_strided_slice %238 {offsets = [0, 48], sizes = [16, 8], strides = [1, 1]} : vector<16x96xf32> to vector<16x8xf32>
    %284 = vector.shape_cast %283 : vector<16x8xf32> to vector<2x8x8xf32>
    %285 = vector.extract_strided_slice %238 {offsets = [0, 80], sizes = [16, 8], strides = [1, 1]} : vector<16x96xf32> to vector<16x8xf32>
    %286 = vector.shape_cast %285 : vector<16x8xf32> to vector<2x8x8xf32>
    "tpu.trace_start"() <{level = 10 : i32, message = "bqd,bkd->bqk"}> : () -> ()
    %cst_133 = arith.constant dense<0.000000e+00> : vector<2x8x8xf32>
    %287 = tpu.matmul %282, %284, %cst_133 {dimension_numbers = #tpu.dot_dimension_numbers<[2], [2], [1], [1], [0, 0, 0, 1, 1, 1], [0], [0]>} : vector<2x8x8xf32>, vector<2x8x8xf32>, vector<2x8x8xf32> -> vector<2x8x8xf32>
    "tpu.trace_stop"() : () -> ()
    %cst_134 = arith.constant 0.353553385 : f32
    %288 = vector.broadcast %cst_134 : f32 to vector<2x8x8xf32>
    %289 = arith.mulf %287, %288 : vector<2x8x8xf32>
    %290 = vector.broadcast %30 : vector<2x1x8xf32> to vector<2x8x8xf32>
    %291 = arith.addf %289, %290 : vector<2x8x8xf32>
    %cst_135 = arith.constant dense<0xFF800000> : vector<2x8xf32>
    %292 = vector.multi_reduction <maximumf>, %291, %cst_135 [2] : vector<2x8x8xf32> to vector<2x8xf32>
    %293 = vector.shape_cast %292 : vector<2x8xf32> to vector<2x8x1xf32>
    %294 = vector.broadcast %293 : vector<2x8x1xf32> to vector<2x8x8xf32>
    %295 = arith.subf %291, %294 : vector<2x8x8xf32>
    %296 = math.exp %295 : vector<2x8x8xf32>
    %cst_136 = arith.constant dense<0.000000e+00> : vector<2x8xf32>
    %297 = vector.multi_reduction <add>, %296, %cst_136 [2] : vector<2x8x8xf32> to vector<2x8xf32>
    %298 = vector.shape_cast %297 : vector<2x8xf32> to vector<2x8x1xf32>
    %299 = vector.broadcast %298 : vector<2x8x1xf32> to vector<2x8x8xf32>
    %300 = arith.divf %296, %299 : vector<2x8x8xf32>
    "tpu.trace_start"() <{level = 10 : i32, message = "bqk,bkd->bqd"}> : () -> ()
    %cst_137 = arith.constant dense<0.000000e+00> : vector<2x8x8xf32>
    %301 = tpu.matmul %300, %286, %cst_137 {dimension_numbers = #tpu.dot_dimension_numbers<[2], [1], [1], [2], [0, 0, 0, 1, 1, 2], [0], [0]>} : vector<2x8x8xf32>, vector<2x8x8xf32>, vector<2x8x8xf32> -> vector<2x8x8xf32>
    "tpu.trace_stop"() : () -> ()
    %302 = vector.extract_strided_slice %238 {offsets = [0, 24], sizes = [16, 8], strides = [1, 1]} : vector<16x96xf32> to vector<16x8xf32>
    %303 = vector.shape_cast %302 : vector<16x8xf32> to vector<2x8x8xf32>
    %304 = vector.extract_strided_slice %238 {offsets = [0, 56], sizes = [16, 8], strides = [1, 1]} : vector<16x96xf32> to vector<16x8xf32>
    %305 = vector.shape_cast %304 : vector<16x8xf32> to vector<2x8x8xf32>
    %306 = vector.extract_strided_slice %238 {offsets = [0, 88], sizes = [16, 8], strides = [1, 1]} : vector<16x96xf32> to vector<16x8xf32>
    %307 = vector.shape_cast %306 : vector<16x8xf32> to vector<2x8x8xf32>
    "tpu.trace_start"() <{level = 10 : i32, message = "bqd,bkd->bqk"}> : () -> ()
    %cst_138 = arith.constant dense<0.000000e+00> : vector<2x8x8xf32>
    %308 = tpu.matmul %303, %305, %cst_138 {dimension_numbers = #tpu.dot_dimension_numbers<[2], [2], [1], [1], [0, 0, 0, 1, 1, 1], [0], [0]>} : vector<2x8x8xf32>, vector<2x8x8xf32>, vector<2x8x8xf32> -> vector<2x8x8xf32>
    "tpu.trace_stop"() : () -> ()
    %cst_139 = arith.constant 0.353553385 : f32
    %309 = vector.broadcast %cst_139 : f32 to vector<2x8x8xf32>
    %310 = arith.mulf %308, %309 : vector<2x8x8xf32>
    %311 = vector.broadcast %30 : vector<2x1x8xf32> to vector<2x8x8xf32>
    %312 = arith.addf %310, %311 : vector<2x8x8xf32>
    %cst_140 = arith.constant dense<0xFF800000> : vector<2x8xf32>
    %313 = vector.multi_reduction <maximumf>, %312, %cst_140 [2] : vector<2x8x8xf32> to vector<2x8xf32>
    %314 = vector.shape_cast %313 : vector<2x8xf32> to vector<2x8x1xf32>
    %315 = vector.broadcast %314 : vector<2x8x1xf32> to vector<2x8x8xf32>
    %316 = arith.subf %312, %315 : vector<2x8x8xf32>
    %317 = math.exp %316 : vector<2x8x8xf32>
    %cst_141 = arith.constant dense<0.000000e+00> : vector<2x8xf32>
    %318 = vector.multi_reduction <add>, %317, %cst_141 [2] : vector<2x8x8xf32> to vector<2x8xf32>
    %319 = vector.shape_cast %318 : vector<2x8xf32> to vector<2x8x1xf32>
    %320 = vector.broadcast %319 : vector<2x8x1xf32> to vector<2x8x8xf32>
    %321 = arith.divf %317, %320 : vector<2x8x8xf32>
    "tpu.trace_start"() <{level = 10 : i32, message = "bqk,bkd->bqd"}> : () -> ()
    %cst_142 = arith.constant dense<0.000000e+00> : vector<2x8x8xf32>
    %322 = tpu.matmul %321, %307, %cst_142 {dimension_numbers = #tpu.dot_dimension_numbers<[2], [1], [1], [2], [0, 0, 0, 1, 1, 2], [0], [0]>} : vector<2x8x8xf32>, vector<2x8x8xf32>, vector<2x8x8xf32> -> vector<2x8x8xf32>
    "tpu.trace_stop"() : () -> ()
    %323 = tpu.concatenate %259, %280, %301, %322 in 2 : vector<2x8x8xf32>, vector<2x8x8xf32>, vector<2x8x8xf32>, vector<2x8x8xf32> -> vector<2x8x32xf32>
    %324 = vector.shape_cast %323 : vector<2x8x32xf32> to vector<16x32xf32>
    %cst_143 = arith.constant dense<0.000000e+00> : vector<16x32xf32>
    %325 = tpu.matmul %324, %217, %cst_143 {dimension_numbers = #tpu.dot_dimension_numbers<[1], [0], [0], [1], [0, 0, 1, 1], [], []>} : vector<16x32xf32>, vector<32x32xf32>, vector<16x32xf32> -> vector<16x32xf32>
    %326 = vector.broadcast %219 : vector<1x32xf32> to vector<16x32xf32>
    %327 = arith.addf %325, %326 : vector<16x32xf32>
    %328 = arith.addf %327, %211 : vector<16x32xf32>
    %cst_144 = arith.constant dense<0.000000e+00> : vector<16xf32>
    %329 = vector.multi_reduction <add>, %328, %cst_144 [1] : vector<16x32xf32> to vector<16xf32>
    %330 = vector.shape_cast %329 : vector<16xf32> to vector<16x1xf32>
    %cst_145 = arith.constant 3.200000e+01 : f32
    %331 = vector.broadcast %cst_145 : f32 to vector<16x1xf32>
    %332 = arith.divf %330, %331 : vector<16x1xf32>
    %333 = vector.broadcast %332 : vector<16x1xf32> to vector<16x32xf32>
    %334 = arith.subf %328, %333 : vector<16x32xf32>
    %335 = arith.mulf %334, %334 : vector<16x32xf32>
    %cst_146 = arith.constant dense<0.000000e+00> : vector<16xf32>
    %336 = vector.multi_reduction <add>, %335, %cst_146 [1] : vector<16x32xf32> to vector<16xf32>
    %337 = vector.shape_cast %336 : vector<16xf32> to vector<16x1xf32>
    %cst_147 = arith.constant 3.200000e+01 : f32
    %338 = vector.broadcast %cst_147 : f32 to vector<16x1xf32>
    %339 = arith.divf %337, %338 : vector<16x1xf32>
    %340 = vector.broadcast %332 : vector<16x1xf32> to vector<16x32xf32>
    %341 = arith.subf %328, %340 : vector<16x32xf32>
    %cst_148 = arith.constant 9.99999974E-6 : f32
    %342 = vector.broadcast %cst_148 : f32 to vector<16x1xf32>
    %343 = arith.addf %339, %342 : vector<16x1xf32>
    %344 = math.rsqrt %343 : vector<16x1xf32>
    %345 = vector.broadcast %344 : vector<16x1xf32> to vector<16x32xf32>
    %346 = arith.mulf %341, %345 : vector<16x32xf32>
    %347 = vector.broadcast %221 : vector<1x32xf32> to vector<16x32xf32>
    %348 = arith.mulf %346, %347 : vector<16x32xf32>
    %349 = vector.broadcast %223 : vector<1x32xf32> to vector<16x32xf32>
    %350 = arith.addf %348, %349 : vector<16x32xf32>
    %cst_149 = arith.constant dense<0.000000e+00> : vector<16x64xf32>
    %351 = tpu.matmul %350, %225, %cst_149 {dimension_numbers = #tpu.dot_dimension_numbers<[1], [0], [0], [1], [0, 0, 1, 1], [], []>} : vector<16x32xf32>, vector<32x64xf32>, vector<16x64xf32> -> vector<16x64xf32>
    %352 = vector.broadcast %227 : vector<1x64xf32> to vector<16x64xf32>
    %353 = arith.addf %351, %352 : vector<16x64xf32>
    %cst_150 = arith.constant 5.000000e-01 : f32
    %354 = vector.broadcast %cst_150 : f32 to vector<16x64xf32>
    %355 = arith.mulf %354, %353 : vector<16x64xf32>
    %cst_151 = arith.constant 4.471500e-02 : f32
    %356 = vector.broadcast %cst_151 : f32 to vector<16x64xf32>
    %357 = arith.mulf %356, %353 : vector<16x64xf32>
    %358 = arith.mulf %357, %353 : vector<16x64xf32>
    %359 = arith.mulf %358, %353 : vector<16x64xf32>
    %360 = arith.addf %353, %359 : vector<16x64xf32>
    %cst_152 = arith.constant 0.797884583 : f32
    %361 = vector.broadcast %cst_152 : f32 to vector<16x64xf32>
    %362 = arith.mulf %361, %360 : vector<16x64xf32>
    %363 = math.tanh %362 : vector<16x64xf32>
    %cst_153 = arith.constant 1.000000e+00 : f32
    %364 = vector.broadcast %cst_153 : f32 to vector<16x64xf32>
    %365 = arith.addf %364, %363 : vector<16x64xf32>
    %366 = arith.mulf %355, %365 : vector<16x64xf32>
    %cst_154 = arith.constant dense<0.000000e+00> : vector<16x32xf32>
    %367 = tpu.matmul %366, %229, %cst_154 {dimension_numbers = #tpu.dot_dimension_numbers<[1], [0], [0], [1], [0, 0, 1, 1], [], []>} : vector<16x64xf32>, vector<64x32xf32>, vector<16x32xf32> -> vector<16x32xf32>
    %368 = vector.broadcast %231 : vector<1x32xf32> to vector<16x32xf32>
    %369 = arith.addf %367, %368 : vector<16x32xf32>
    %370 = arith.addf %369, %350 : vector<16x32xf32>
    %cst_155 = arith.constant dense<0.000000e+00> : vector<16xf32>
    %371 = vector.multi_reduction <add>, %370, %cst_155 [1] : vector<16x32xf32> to vector<16xf32>
    %372 = vector.shape_cast %371 : vector<16xf32> to vector<16x1xf32>
    %cst_156 = arith.constant 3.200000e+01 : f32
    %373 = vector.broadcast %cst_156 : f32 to vector<16x1xf32>
    %374 = arith.divf %372, %373 : vector<16x1xf32>
    %375 = vector.broadcast %374 : vector<16x1xf32> to vector<16x32xf32>
    %376 = arith.subf %370, %375 : vector<16x32xf32>
    %377 = arith.mulf %376, %376 : vector<16x32xf32>
    %cst_157 = arith.constant dense<0.000000e+00> : vector<16xf32>
    %378 = vector.multi_reduction <add>, %377, %cst_157 [1] : vector<16x32xf32> to vector<16xf32>
    %379 = vector.shape_cast %378 : vector<16xf32> to vector<16x1xf32>
    %cst_158 = arith.constant 3.200000e+01 : f32
    %380 = vector.broadcast %cst_158 : f32 to vector<16x1xf32>
    %381 = arith.divf %379, %380 : vector<16x1xf32>
    %382 = vector.broadcast %374 : vector<16x1xf32> to vector<16x32xf32>
    %383 = arith.subf %370, %382 : vector<16x32xf32>
    %cst_159 = arith.constant 9.99999974E-6 : f32
    %384 = vector.broadcast %cst_159 : f32 to vector<16x1xf32>
    %385 = arith.addf %381, %384 : vector<16x1xf32>
    %386 = math.rsqrt %385 : vector<16x1xf32>
    %387 = vector.broadcast %386 : vector<16x1xf32> to vector<16x32xf32>
    %388 = arith.mulf %383, %387 : vector<16x32xf32>
    %389 = vector.broadcast %233 : vector<1x32xf32> to vector<16x32xf32>
    %390 = arith.mulf %388, %389 : vector<16x32xf32>
    %391 = vector.broadcast %235 : vector<1x32xf32> to vector<16x32xf32>
    %392 = arith.addf %390, %391 : vector<16x32xf32>
    %393 = vector.shape_cast %392 : vector<16x32xf32> to vector<2x8x32xf32>
    %394 = vector.extract_strided_slice %393 {offsets = [0, 0, 0], sizes = [2, 1, 32], strides = [1, 1, 1]} : vector<2x8x32xf32> to vector<2x1x32xf32>
    %395 = vector.shape_cast %394 : vector<2x1x32xf32> to vector<2x32xf32>
    %c0_160 = arith.constant 0 : index
    %c0_161 = arith.constant 0 : index
    %396 = vector.load %arg16[%c0_160, %c0_161] : memref<32x32xf32, #tpu.memory_space<vmem>>, vector<32x32xf32>
    %cst_162 = arith.constant dense<0.000000e+00> : vector<2x32xf32>
    %397 = tpu.matmul %395, %396, %cst_162 {dimension_numbers = #tpu.dot_dimension_numbers<[1], [0], [0], [1], [0, 0, 1, 1], [], []>} : vector<2x32xf32>, vector<32x32xf32>, vector<2x32xf32> -> vector<2x32xf32>
    %c0_163 = arith.constant 0 : index
    %c0_164 = arith.constant 0 : index
    %398 = vector.load %arg17[%c0_163, %c0_164] : memref<1x32xf32, #tpu.memory_space<vmem>>, vector<1x32xf32>
    %399 = vector.broadcast %398 : vector<1x32xf32> to vector<2x32xf32>
    %400 = arith.addf %397, %399 : vector<2x32xf32>
    %401 = math.tanh %400 : vector<2x32xf32>
    %402 = arith.mulf %401, %401 : vector<2x32xf32>
    %cst_165 = arith.constant dense<0.000000e+00> : vector<2xf32>
    %403 = vector.multi_reduction <add>, %402, %cst_165 [1] : vector<2x32xf32> to vector<2xf32>
    %404 = vector.shape_cast %403 : vector<2xf32> to vector<2x1xf32>
    %405 = math.sqrt %404 : vector<2x1xf32>
    %cst_166 = arith.constant 9.99999996E-13 : f32
    %406 = vector.broadcast %cst_166 : f32 to vector<2x1xf32>
    %407 = arith.maximumf %405, %406 : vector<2x1xf32>
    %408 = vector.broadcast %407 : vector<2x1xf32> to vector<2x32xf32>
    %409 = arith.divf %401, %408 : vector<2x32xf32>
    %c0_167 = arith.constant 0 : index
    %c0_168 = arith.constant 0 : index
    %410 = vector.load %arg18[%c0_167, %c0_168] : memref<2x32xf32, #tpu.memory_space<vmem>>, vector<2x32xf32>
    tpu.vector_store %arg18[%c0_167, %c0_168], %409 {strides = array<i32>} : memref<2x32xf32, #tpu.memory_space<vmem>>, vector<2x32xf32>,
    return
  }
}

</mosaic_0001>

<bundles_post_ra>
// kernel: codebert_forward.1
= control target key start
LH: loop header
LB: loop body
LE: loop exit
PB: predicated region body
PF: predicated region fallthrough
CT: control target
= control target key end

     0   :  { %s3213_s0 = inlined_call_operand.vmem [shape: f32[16,32], index: 0, kind: input, shape index: {}]   ;;  %s3214_s1 = inlined_call_operand.vmem [shape: f32[2,8], index: 1, kind: input, shape index: {}]   ;;  %s3215_s2 = inlined_call_operand.vmem [shape: f32[1,32], index: 2, kind: input, shape index: {}]   ;;  %s3216_s3 = inlined_call_operand.vmem [shape: f32[1,32], index: 3, kind: input, shape index: {}]   ;;  %s3217_s4 = inlined_call_operand.vmem [shape: f32[2,32,96], index: 4, kind: input, shape index: {}]   ;;  %s3218_s5 = inlined_call_operand.vmem [shape: f32[2,1,96], index: 5, kind: input, shape index: {}]   ;;  %s3219_s6 = inlined_call_operand.vmem [shape: f32[2,32,32], index: 6, kind: input, shape index: {}]   ;;  %s3220_s7 = inlined_call_operand.vmem [shape: f32[2,1,32], index: 7, kind: input, shape index: {}]   ;;  %s3221_s8 = inlined_call_operand.vmem [shape: f32[2,1,32], index: 8, kind: input, shape index: {}]   ;;  %s3222_s9 = inlined_call_operand.vmem [shape: f32[2,1,32], index: 9, kind: input, shape index: {}]   ;;  %s3223_s10 = inlined_call_operand.vmem [shape: f32[2,32,64], index: 10, kind: input, shape index: {}]   ;;  %s3224_s11 = inlined_call_operand.vmem [shape: f32[2,1,64], index: 11, kind: input, shape index: {}]   ;;  %s3225_s12 = inlined_call_operand.vmem [shape: f32[2,64,32], index: 12, kind: input, shape index: {}]   ;;  %s3226_s13 = inlined_call_operand.vmem [shape: f32[2,1,32], index: 13, kind: input, shape index: {}]   ;;  %s3227_s14 = inlined_call_operand.vmem [shape: f32[2,1,32], index: 14, kind: input, shape index: {}]   ;;  %s3228_s15 = inlined_call_operand.vmem [shape: f32[2,1,32], index: 15, kind: input, shape index: {}]   ;;  %s3229_s16 = inlined_call_operand.vmem [shape: f32[32,32], index: 16, kind: input, shape index: {}]   ;;  %s3230_s17 = inlined_call_operand.vmem [shape: f32[1,32], index: 17, kind: input, shape index: {}]   ;;  %s3231_s18 = inlined_call_operand.hbm [shape: f32[2,32], index: 18, kind: output, shape index: {}]  }
   0x1   :  { %3245 = sst [smem:[#allocation5_spill]] %s3213_s0 }
   0x2   :  { %3246 = sst [smem:[#allocation6_spill]] %s3214_s1 }
   0x3   :  { %3247 = sst [smem:[#allocation7_spill]] %s3215_s2 }
   0x4   :  { %s3248_s29 = sld [smem:[#allocation5_spill]]  ;;  %vm64_vm0 = vcmask 261120  }
   0xa   :  { %v60_v0 = vld [vmem:[%s3248_s29] sm:$0xff]  ;;  %v61_v2 = vld [vmem:[%s3248_s29 + $0x8] sm:$0xff] }
   0xb   :  { %v65_v1 = vsel %vm64_vm0, %v60_v0, 0.0  ;;  %v68_v3 = vsel %vm64_vm0, %v61_v2, 0.0 }
   0xc   :  { %66 = vadd.xlane.f32.xlu0 %v65_v1 }
   0xd   :  { %23 = vsyncpa [#allocation3], 0  ;;  %v2424_v4 = vmov 32.0   ;;  %v134_v21 = vld [vmem:[%s3217_s4 + $0x18] sm:$0xff]  ;;  %v133_v22 = vld [vmem:[%s3217_s4 + $0x10] sm:$0xff]  ;;  %s3249_s27 = sld [smem:[#allocation7_spill]] }
   0xe   :  { %2298 = vrcp.f32 %v2424_v4  ;;  %180 = vmatpush.msra.mxu0 %v134_v21  ;;  %v132_v23 = vld [vmem:[%s3217_s4 + $0x8] sm:$0xff]  ;;  %v131_v24 = vld [vmem:[%s3217_s4] sm:$0xff]  ;;  %s2425_s0 = smov 96   ;;  %s2426_s19 = smov 120   ;;  %vm194_vm8 = vcmask 64512  }
   0xf   :  { %v2280_v43 = vld [vmem:[%s3216_s3] ss:$0 sm:$0xff]  ;;  %s2427_s1 = smov 88   ;;  %s2428_s20 = smov 104  }
  0x10   :  { %181 = vmatpush.msra.mxu0 %v133_v22  ;;  %v2281_v53 = vld [vmem:[%s3218_s5] ss:$0 sm:$0xff]  ;;  %s2429_s21 = smov 112   ;;  %s3243_s22 = smov 72  }
  0x11   :  { %s2431_s2 = smov 80   ;;  %s3250_s25 = sld [smem:[#allocation6_spill]] }
  0x12   :  { %182 = vmatpush.msra.mxu0 %v132_v23  ;;  %s3240_s26 = smov 64   ;;  %s3233_s28 = smov 48  }
  0x13   :  { %v2279_v39 = vld [vmem:[%s3249_s27] ss:$0 sm:$0xff]  ;;  %s3234_s27 = smov 56   ;;  %s3235_s29 = smov 40  }
  0x14   :  { %69 = vadd.xlane.f32.xlu0 %v68_v3  ;;  %v2299_v5 = vpop.eup %2298  ;;  %183 = vmatpush.msra.mxu0 %v131_v24  ;;  %s3238_s3 = smov 8   ;;  %s3236_s30 = smov 16  }
  0x15   :  { %v72_v6 = vmul.f32 32.0, %v2299_v5  ;;  %vm76_vm1 = vweird.f32 %v2299_v5  ;;  %s3241_s23 = smov 24   ;;  %s2136_s24 = sshll.u32 %s3231_s18, 4  ;;  %s2137_s24 = int_to_ptr.hbm [resolvable:$true] %s2136_s24 }
  0x17   :  { %v73_v7 = vsub.f32 1.0, %v72_v6 }
  0x19   :  { %v74_v8 = vmul.f32 %v2299_v5, %v73_v7 }
  0x1b   :  { %v75_v9 = vadd.f32 %v2299_v5, %v74_v8  ;;  %v126_v8 = vld [vmem:[%s3250_s25] sm:$0x3] }
  0x1d   :  { %v2543_v10 = vsel %vm76_vm1, %v2299_v5, %v75_v9  ;;  %v127_v9 = vsub.f32 1.0, %v126_v8 }
  0x7f   :  { %v67_v11 = vpop.xlane.xlu0 %66 }
  0x80   :  { %v78_v12 = vmul.f32 %v2543_v10, %v67_v11  ;;  %v128_v11 = vmul.f32 -1e+09, %v127_v9 }
  0x82   :  { %v80_v13 = vsub.f32 %v60_v0, %v78_v12  ;;  %v2633_v12 = vperm.slane %v128_v11, 0 }
  0x84   :  { %v82_v14 = vmul.f32 %v80_v13, %v80_v13 }
  0x86   :  { %v84_v15 = vsel %vm64_vm0, %v82_v14, 0.0 }
  0x87   :  { %85 = vadd.xlane.f32.xlu1 %v84_v15  ;;  %v70_v16 = vpop.xlane.xlu0 %69 }
  0x88   :  { %v79_v17 = vmul.f32 %v2543_v10, %v70_v16  ;;  %v130_v16 = vrot.slane %v128_v11, 1 }
  0x8a   :  { %v81_v18 = vsub.f32 %v61_v2, %v79_v17 }
  0x8c   :  { %v83_v19 = vmul.f32 %v81_v18, %v81_v18 }
  0x8e   :  { %v87_v20 = vsel %vm64_vm0, %v83_v19, 0.0 }
  0x8f   :  { %88 = vadd.xlane.f32.xlu1 %v87_v20 }
  0xfa   :  { %v86_v25 = vpop.xlane.xlu1 %85 }
  0xfb   :  { %v90_v26 = vmul.f32 %v86_v25, %v2543_v10 }
  0xfd   :  { %v92_v27 = vadd.f32 1e-05, %v90_v26 }
  0xff   :  { %2300 = vrsqrt.f32 %v92_v27  ;;  %vm100_vm3 = vweird.f32 %v92_v27 }
 0x102   :  { %v89_v28 = vpop.xlane.xlu1 %88 }
 0x103   :  { %v91_v29 = vmul.f32 %v89_v28, %v2543_v10 }
 0x105   :  { %v2301_v30 = vpop.eup %2300  ;;  %v93_v31 = vadd.f32 1e-05, %v91_v29 }
 0x106   :  { %v95_v32 = vmul.f32 %v2301_v30, %v92_v27  ;;  %vm101_vm2 = vweird.f32 %v2301_v30 }
 0x107   :  { %2302 = vrsqrt.f32 %v93_v31  ;;  %vm102_vm4 = vmor %vm100_vm3, %vm101_vm2  ;;  %vm110_vm6 = vweird.f32 %v93_v31 }
 0x108   :  { %v96_v33 = vmul.f32 %v2301_v30, %v95_v32 }
 0x10a   :  { %v97_v34 = vmul.f32 0.5, %v96_v33 }
 0x10c   :  { %v98_v35 = vsub.f32 1.5, %v97_v34 }
 0x10d   :  { %v2303_v36 = vpop.eup %2302 }
 0x10e   :  { %v99_v37 = vmul.f32 %v2301_v30, %v98_v35  ;;  %v105_v38 = vmul.f32 %v2303_v36, %v93_v31  ;;  %vm111_vm5 = vweird.f32 %v2303_v36 }
 0x10f   :  { %vm112_vm7 = vmor %vm110_vm6, %vm111_vm5 }
 0x110   :  { %v103_v40 = vsel %vm102_vm4, %v2301_v30, %v99_v37  ;;  %v106_v41 = vmul.f32 %v2303_v36, %v105_v38 }
 0x111   :  { %v114_v42 = vmul.f32 %v103_v40, %v80_v13 }
 0x112   :  { %v107_v44 = vmul.f32 0.5, %v106_v41 }
 0x113   :  { %v119_v45 = vmul.f32 %v2279_v39, %v114_v42 }
 0x114   :  { %v108_v46 = vsub.f32 1.5, %v107_v44 }
 0x115   :  { %v2569_v47 = vadd.f32 %v2280_v43, %v119_v45 }
 0x116   :  { %v109_v48 = vmul.f32 %v2303_v36, %v108_v46 }
 0x117   :  { %2145 = vmatmul.msk.f32.vlgmr.msra.gmra.mxu0 %vm64_vm0, %v2569_v47 }
 0x118   :  { %v113_v49 = vsel %vm112_vm7, %v2303_v36, %v109_v48 }
 0x119   :  { %v115_v50 = vmul.f32 %v113_v49, %v81_v18  ;;  %v2637_v18 = vperm.slane %v130_v16, 0 }
 0x11b   :  { %v120_v51 = vmul.f32 %v2279_v39, %v115_v50 }
 0x11d   :  { %v2573_v52 = vadd.f32 %v2280_v43, %v120_v51 }
 0x11f   :  { %2146 = vmatmul.msk.f32.gmra.mxu0 %vm64_vm0, %v2573_v52 }
 0x194   :  { %v185_v54 = vpop.f32.mrf.mxu0 }
 0x195   :  { %v2580_v55 = vadd.f32 %v2281_v53, %v185_v54 }
 0x197   :  { %192 = vrot.lane.b32.xlu2 %v2580_v55, %s2425_s0 }
 0x19c   :  { %v188_v56 = vpop.f32.mrf.mxu0 }
 0x19d   :  { %v2584_v57 = vadd.f32 %v2281_v53, %v188_v56 }
 0x19f   :  { %382 = vrot.lane.b32.xlu1 %v2584_v57, %s2426_s19  ;;  %384 = vrot.lane.b32.xlu0 %v2584_v57, %s2427_s1  ;;  %v2254_v48 = vpack.i.bf16 %v2584_v57, %v2580_v55 }
 0x1a0   :  { %220 = vrot.lane.b32.xlu2 %v2584_v57, %s2425_s0 }
 0x1a7   :  { %674 = vrot.lane.b32.xlu1 %v2580_v55, %s2428_s20  ;;  %514 = vrot.lane.b32.xlu0 %v2580_v55, %s2429_s21 }
 0x1a8   :  { %356 = vrot.lane.b32.xlu2 %v2580_v55, %s2427_s1 }
 0x1af   :  { %704 = vrot.lane.b32.xlu1 %v2584_v57, %s3243_s22  ;;  %544 = vrot.lane.b32.xlu0 %v2584_v57, %s2431_s2 }
 0x1b0   :  { %516 = vrot.lane.b32.xlu2 %v2580_v55, %s2431_s2 }
 0x1b7   :  { %702 = vrot.lane.b32.xlu0 %v2584_v57, %s2428_s20 }
 0x1b8   :  { %354 = vrot.lane.b32.xlu2 %v2580_v55, %s2426_s19 }
 0x1c0   :  { %676 = vrot.lane.b32.xlu2 %v2580_v55, %s3243_s22 }
 0x1c8   :  { %542 = vrot.lane.b32.xlu2 %v2584_v57, %s2429_s21 }
 0x1f1   :  { %v193_v58 = vpop.permute.xlu2 %192 }
 0x1f2   :  { %2147 = vmatpush.xpose.msk.msra.mxu2 %vm194_vm8, %v193_v58 }
 0x1f5   :  { %2148 = vmatmul.msk.f32.vlgmr.msra.gmra.mxu2 %vm194_vm8, %v2580_v55 }
 0x1fa   :  { %v221_v59 = vpop.permute.xlu2 %220 }
 0x1fb   :  { %2149 = vmatpush.xpose.msk.msrb.mxu2 %vm194_vm8, %v221_v59 }
 0x1fe   :  { %2150 = vmatmul.msk.f32.vlgmr.msrb.gmra.mxu2 %vm194_vm8, %v2584_v57 }
 0x202   :  { %v357_v60 = vpop.permute.xlu2 %356 }
 0x203   :  { %2153 = vmatpush.xpose.msk.msra.mxu1 %vm194_vm8, %v357_v60 }
 0x20a   :  { %v517_v61 = vpop.permute.xlu2 %516 }
 0x211   :  { %v383_v62 = vpop.permute.xlu1 %382  ;;  %v385_v63 = vpop.permute.xlu0 %384 }
 0x212   :  { %v355_v0 = vpop.permute.xlu2 %354  ;;  %2155 = vmatpush.xpose.msk.msra.mxu2 %vm194_vm8, %v385_v63 }
 0x213   :  { %2154 = vmatmul.msk.f32.vlgmr.msra.gmra.mxu1 %vm194_vm8, %v355_v0 }
 0x215   :  { %2156 = vmatmul.msk.f32.vlgmr.msra.gmra.mxu2 %vm194_vm8, %v383_v62 }
 0x216   :  { %2159 = vmatpush.xpose.msk.msrb.mxu2 %vm194_vm8, %v517_v61 }
 0x219   :  { %v675_v1 = vpop.permute.xlu1 %674  ;;  %v515_v2 = vpop.permute.xlu0 %514 }
 0x21a   :  { %v677_v3 = vpop.permute.xlu2 %676 }
 0x21b   :  { %2165 = vmatpush.xpose.msk.msra.mxu2 %vm194_vm8, %v677_v3 }
 0x21d   :  { %2160 = vmatmul.msk.f32.vlgmr.msrb.gmra.mxu2 %vm194_vm8, %v515_v2 }
 0x221   :  { %v705_v4 = vpop.permute.xlu1 %704  ;;  %v545_v5 = vpop.permute.xlu0 %544 }
 0x222   :  { %2161 = vmatpush.xpose.msk.msrb.mxu0 %vm194_vm8, %v545_v5  ;;  %v543_v6 = vpop.permute.xlu2 %542 }
 0x225   :  { %2162 = vmatmul.msk.f32.vlgmr.msrb.gmra.mxu0 %vm194_vm8, %v543_v6  ;;  %2166 = vmatmul.msk.f32.vlgmr.msra.gmra.mxu2 %vm194_vm8, %v675_v1 }
 0x226   :  { %2167 = vmatpush.xpose.msk.msra.mxu0 %vm194_vm8, %v705_v4 }
 0x229   :  { %v703_v7 = vpop.permute.xlu0 %702 }
 0x22d   :  { %2168 = vmatmul.msk.f32.vlgmr.msra.gmra.mxu0 %vm194_vm8, %v703_v7 }
 0x278   :  { %v216_v13 = vpop.f32.mrf.mxu2 }
 0x279   :  { %v246_v14 = vmul.f32 0.35355338, %v216_v13 }
 0x27b   :  { %v252_v15 = vadd.f32 %v2633_v12, %v246_v14 }
 0x27d   :  { %v254_v17 = vsel %vm194_vm8, %v252_v15, -inf }
 0x27e   :  { %255 = vmax.xlane.f32.xlu2 %v254_v17 }
 0x281   :  { %v243_v19 = vpop.f32.mrf.mxu2 }
 0x282   :  { %v247_v20 = vmul.f32 0.35355338, %v243_v19 }
 0x284   :  { %v253_v21 = vadd.f32 %v2637_v18, %v247_v20 }
 0x286   :  { %v257_v22 = vsel %vm194_vm8, %v253_v21, -inf }
 0x287   :  { %258 = vmax.xlane.f32.xlu1 %v257_v22 }
 0x290   :  { %v379_v23 = vpop.f32.mrf.mxu1 }
 0x291   :  { %v410_v24 = vmul.f32 0.35355338, %v379_v23 }
 0x293   :  { %v412_v25 = vadd.f32 %v410_v24, %v2633_v12 }
 0x295   :  { %v414_v26 = vsel %vm194_vm8, %v412_v25, -inf }
 0x296   :  { %415 = vmax.xlane.f32.xlu0 %v414_v26 }
 0x298   :  { %v407_v27 = vpop.f32.mrf.mxu2 }
 0x299   :  { %v411_v42 = vmul.f32 0.35355338, %v407_v27 }
 0x29b   :  { %v413_v45 = vadd.f32 %v411_v42, %v2637_v18 }
 0x29d   :  { %v417_v46 = vsel %vm194_vm8, %v413_v45, -inf }
 0x2a0   :  { %v539_v28 = vpop.f32.mrf.mxu2 }
 0x2a1   :  { %v570_v32 = vmul.f32 0.35355338, %v539_v28 }
 0x2a2   :  { %v567_v29 = vpop.f32.mrf.mxu0 }
 0x2a3   :  { %v571_v30 = vmul.f32 0.35355338, %v567_v29  ;;  %v572_v39 = vadd.f32 %v570_v32, %v2633_v12 }
 0x2a5   :  { %v573_v31 = vadd.f32 %v571_v30, %v2637_v18  ;;  %v574_v44 = vsel %vm194_vm8, %v572_v39, -inf }
 0x2a7   :  { %v577_v33 = vsel %vm194_vm8, %v573_v31, -inf }
 0x2a8   :  { %v699_v34 = vpop.f32.mrf.mxu2  ;;  %578 = vmax.xlane.f32.xlu2 %v577_v33 }
 0x2a9   :  { %v730_v35 = vmul.f32 0.35355338, %v699_v34 }
 0x2aa   :  { %v727_v36 = vpop.f32.mrf.mxu0 }
 0x2ab   :  { %v731_v37 = vmul.f32 0.35355338, %v727_v36  ;;  %v2646_v38 = vadd.f32 %v730_v35, %v2633_v12 }
 0x2ad   :  { %v734_v40 = vsel %vm194_vm8, %v2646_v38, -inf  ;;  %v733_v41 = vadd.f32 %v731_v37, %v2637_v18 }
 0x2ae   :  { %735 = vmax.xlane.f32.xlu0 %v734_v40 }
 0x2af   :  { %v737_v43 = vsel %vm194_vm8, %v733_v41, -inf }
 0x2b0   :  { %738 = vmax.xlane.f32.xlu1 %v737_v43  ;;  %575 = vmax.xlane.f32.xlu2 %v574_v44 }
 0x2b8   :  { %418 = vmax.xlane.f32.xlu1 %v417_v46 }
 0x2c2   :  { %2255 = vrot.lane.b32.xlu0 %v2254_v48, %s3240_s26 }
 0x2d1   :  { %462 = vrot.lane.b32.xlu1 %v2580_v55, %s3234_s27 }
 0x2f1   :  { %v256_v49 = vpop.xlane.xlu2 %255 }
 0x2f2   :  { %v260_v50 = vsub.f32 %v252_v15, %v256_v49 }
 0x2f4   :  { %v262_v51 = vmul.f32 1.442695, %v260_v50 }
 0x2f6   :  { %2304 = vpow2.f32 %v262_v51 }
 0x2fa   :  { %v259_v62 = vpop.xlane.xlu1 %258 }
 0x2fb   :  { %v261_v1 = vsub.f32 %v253_v21, %v259_v62 }
 0x2fc   :  { %v2661_v53 = vpop.eup %2304 }
 0x2fd   :  { %v266_v54 = vsel %vm194_vm8, %v2661_v53, 0.0  ;;  %v264_v3 = vmul.f32 1.442695, %v261_v1 }
 0x2fe   :  { %267 = vadd.xlane.f32.xlu0 %v266_v54 }
 0x309   :  { %v416_v56 = vpop.xlane.xlu0 %415 }
 0x30a   :  { %v420_v58 = vsub.f32 %v412_v25, %v416_v56 }
 0x30c   :  { %v422_v59 = vmul.f32 1.442695, %v420_v58 }
 0x30e   :  { %2306 = vpow2.f32 %v422_v59 }
 0x312   :  { %622 = vrot.lane.b32.xlu0 %v2580_v55, %s3233_s28 }
 0x314   :  { %v2667_v60 = vpop.eup %2306 }
 0x315   :  { %v426_v61 = vsel %vm194_vm8, %v2667_v60, 0.0 }
 0x316   :  { %427 = vadd.xlane.f32.xlu1 %v426_v61 }
 0x31a   :  { %488 = vrot.lane.b32.xlu0 %v2584_v57, %s3234_s27  ;;  %s3266_s27 = smov 24  }
 0x31b   :  { %v579_v63 = vpop.xlane.xlu2 %578 }
 0x31c   :  { %v581_v0 = vsub.f32 %v573_v31, %v579_v63 }
 0x31e   :  { %v584_v2 = vmul.f32 1.442695, %v581_v0 }
 0x320   :  { %2308 = vpow2.f32 %v584_v2 }
 0x321   :  { %2310 = vpow2.f32 %v264_v3  ;;  %v736_v13 = vpop.xlane.xlu0 %735 }
 0x322   :  { %648 = vrot.lane.b32.xlu0 %v2584_v57, %s3233_s28  ;;  %v740_v26 = vsub.f32 %v2646_v38, %v736_v13 }
 0x323   :  { %v739_v4 = vpop.xlane.xlu1 %738  ;;  %v576_v14 = vpop.xlane.xlu2 %575 }
 0x324   :  { %v741_v6 = vsub.f32 %v733_v41, %v739_v4  ;;  %v580_v17 = vsub.f32 %v572_v39, %v576_v14  ;;  %v742_v29 = vmul.f32 1.442695, %v740_v26 }
 0x326   :  { %v2675_v5 = vpop.eup %2308  ;;  %v744_v8 = vmul.f32 1.442695, %v741_v6  ;;  %v582_v20 = vmul.f32 1.442695, %v580_v17 }
 0x327   :  { %v589_v7 = vsel %vm194_vm8, %v2675_v5, 0.0  ;;  %v2679_v11 = vpop.eup %2310 }
 0x328   :  { %590 = vadd.xlane.f32.xlu2 %v589_v7  ;;  %2312 = vpow2.f32 %v744_v8  ;;  %v269_v19 = vsel %vm194_vm8, %v2679_v11, 0.0 }
 0x32b   :  { %v419_v9 = vpop.xlane.xlu1 %418 }
 0x32c   :  { %v421_v15 = vsub.f32 %v413_v45, %v419_v9 }
 0x32e   :  { %v424_v16 = vmul.f32 1.442695, %v421_v15  ;;  %v2683_v22 = vpop.eup %2312 }
 0x32f   :  { %v749_v28 = vsel %vm194_vm8, %v2683_v22, 0.0 }
 0x330   :  { %2314 = vpow2.f32 %v424_v16  ;;  %270 = vadd.xlane.f32.xlu2 %v269_v19 }
 0x331   :  { %2316 = vpow2.f32 %v582_v20 }
 0x332   :  { %2318 = vpow2.f32 %v742_v29 }
 0x334   :  { %v2256_v21 = vpop.permute.xlu0 %2255 }
 0x335   :  { %v2257_v23 = vunpack.i.l.bf16 %v2256_v21  ;;  %v2258_v24 = vunpack.i.h.bf16 %v2256_v21 }
 0x336   :  { %v2685_v25 = vpop.eup %2314 }
 0x337   :  { %323 = vmatpush.msra.mxu3 %v2257_v23  ;;  %v429_v27 = vsel %vm194_vm8, %v2685_v25, 0.0  ;;  %v2692_v30 = vpop.eup %2316 }
 0x338   :  { %430 = vadd.xlane.f32.xlu1 %v429_v27  ;;  %750 = vadd.xlane.f32.xlu2 %v749_v28  ;;  %v586_v31 = vsel %vm194_vm8, %v2692_v30, 0.0  ;;  %v2696_v32 = vpop.eup %2318 }
 0x339   :  { %349 = vmatpush.msrb.mxu3 %v2258_v24  ;;  %v746_v33 = vsel %vm194_vm8, %v2696_v32, 0.0 }
 0x340   :  { %587 = vadd.xlane.f32.xlu2 %v586_v31 }
 0x348   :  { %747 = vadd.xlane.f32.xlu2 %v746_v33 }
 0x351   :  { %808 = vrot.lane.b32.xlu1 %v2584_v57, %s3235_s29 }
 0x360   :  { %782 = vrot.lane.b32.xlu2 %v2580_v55, %s3235_s29  ;;  %v463_v55 = vpop.permute.xlu1 %462 }
 0x371   :  { %v268_v34 = vpop.xlane.xlu0 %267 }
 0x372   :  { %2320 = vrcp.f32 %v268_v34  ;;  %v283_v38 = vand.u32 2147483648, %v268_v34  ;;  %v281_v40 = vand.u32 2147483647, %v268_v34  ;;  %vm277_vm10 = vweird.f32 %v268_v34 }
 0x374   :  { %v284_v42 = vor.u32 1.1754944e-38, %v283_v38  ;;  %vm282_vm12 = vcmp.eq.f32.partialorder %v281_v40, 8.507059e+37 }
 0x378   :  { %v2321_v35 = vpop.eup %2320 }
 0x379   :  { %v273_v36 = vmul.f32 %v2321_v35, %v268_v34  ;;  %vm278_vm9 = vweird.f32 %v2321_v35 }
 0x37a   :  { %vm279_vm11 = vmor %vm277_vm10, %vm278_vm9 }
 0x37b   :  { %v274_v37 = vsub.f32 1.0, %v273_v36 }
 0x37d   :  { %v275_v39 = vmul.f32 %v2321_v35, %v274_v37 }
 0x37f   :  { %v276_v41 = vadd.f32 %v2321_v35, %v275_v39 }
 0x381   :  { %v280_v43 = vsel %vm279_vm11, %v2321_v35, %v276_v41 }
 0x382   :  { %v285_v44 = vsel %vm282_vm12, %v284_v42, %v280_v43 }
 0x383   :  { %v286_v57 = vmul.f32 %v2661_v53, %v285_v44 }
 0x384   :  { %v2705_v45 = vpop.permute.xlu0 %622 }
 0x385   :  { %2151 = vmatmul.msk.f32.vlgmr.msra.gmra.mxu3 %vm194_vm8, %v286_v57 }
 0x386   :  { %483 = vmatpush.msra.mxu3 %v463_v55 }
 0x389   :  { %v428_v49 = vpop.xlane.xlu1 %427 }
 0x38a   :  { %2322 = vrcp.f32 %v428_v49  ;;  %vm437_vm3 = vweird.f32 %v428_v49  ;;  %v443_v17 = vand.u32 2147483648, %v428_v49  ;;  %v441_v24 = vand.u32 2147483647, %v428_v49 }
 0x38c   :  { %v489_v46 = vpop.permute.xlu0 %488  ;;  %v444_v35 = vor.u32 1.1754944e-38, %v443_v17  ;;  %vm442_vm6 = vcmp.eq.f32.partialorder %v441_v24, 8.507059e+37 }
 0x38d   :  { %509 = vmatpush.msrb.mxu1 %v489_v46 }
 0x390   :  { %v2323_v51 = vpop.eup %2322 }
 0x391   :  { %v433_v53 = vmul.f32 %v2323_v51, %v428_v49  ;;  %vm438_vm15 = vweird.f32 %v2323_v51 }
 0x392   :  { %vm2720_vm4 = vmor %vm437_vm3, %vm438_vm15 }
 0x393   :  { %v434_v58 = vsub.f32 1.0, %v433_v53 }
 0x394   :  { %v649_v48 = vpop.permute.xlu0 %648 }
 0x395   :  { %669 = vmatpush.msra.mxu1 %v649_v48  ;;  %v435_v1 = vmul.f32 %v2323_v51, %v434_v58 }
 0x397   :  { %v436_v9 = vadd.f32 %v2323_v51, %v435_v1 }
 0x399   :  { %v440_v27 = vsel %vm2720_vm4, %v2323_v51, %v436_v9 }
 0x39a   :  { %v445_v38 = vsel %vm442_vm6, %v444_v35, %v440_v27  ;;  %v139_v35 = vld [vmem:[%s3219_s6 + $0x18] sm:$0xff] }
 0x39b   :  { %v2708_v50 = vpop.xlane.xlu2 %590  ;;  %v446_v49 = vmul.f32 %v2667_v60, %v445_v38  ;;  %887 = vmatpush.msrb.mxu2 %v139_v35  ;;  %v136_v38 = vld [vmem:[%s3219_s6] sm:$0xff] }
 0x39c   :  { %vm612_vm12 = vweird.f32 %v2708_v50  ;;  %v618_v55 = vand.u32 2147483648, %v2708_v50  ;;  %v616_v46 = vand.u32 2147483647, %v2708_v50 }
 0x39e   :  { %vm617_vm15 = vcmp.eq.f32.partialorder %v616_v46, 8.507059e+37 }
 0x3a3   :  { %v271_v54 = vpop.xlane.xlu2 %270 }
 0x3a4   :  { %2324 = vrcp.f32 %v271_v54  ;;  %v298_v3 = vand.u32 2147483648, %v271_v54  ;;  %v296_v6 = vand.u32 2147483647, %v271_v54  ;;  %vm292_vm14 = vweird.f32 %v271_v54 }
 0x3a5   :  { %2326 = vrcp.f32 %v2708_v50 }
 0x3a6   :  { %v299_v13 = vor.u32 1.1754944e-38, %v298_v3  ;;  %vm297_vm2 = vcmp.eq.f32.partialorder %v296_v6, 8.507059e+37 }
 0x3aa   :  { %v2325_v56 = vpop.eup %2324 }
 0x3ab   :  { %v2711_v59 = vpop.eup %2326  ;;  %v288_v61 = vmul.f32 %v2325_v56, %v271_v54  ;;  %v431_v62 = vpop.xlane.xlu1 %430  ;;  %vm293_vm13 = vweird.f32 %v2325_v56 }
 0x3ac   :  { %2328 = vrcp.f32 %v431_v62  ;;  %v2713_v63 = vpop.xlane.xlu2 %750  ;;  %v608_v2 = vmul.f32 %v2711_v59, %v2708_v50  ;;  %vm294_vm1 = vmor %vm292_vm14, %vm293_vm13  ;;  %v458_v28 = vand.u32 2147483648, %v431_v62  ;;  %v456_v34 = vand.u32 2147483647, %v431_v62 }
 0x3ad   :  { %v289_v0 = vsub.f32 1.0, %v288_v61  ;;  %2330 = vrcp.f32 %v2713_v63  ;;  %vm452_vm7 = vweird.f32 %v431_v62  ;;  %vm613_vm10 = vweird.f32 %v2711_v59 }
 0x3ae   :  { %v609_v14 = vsub.f32 1.0, %v608_v2  ;;  %v459_v39 = vor.u32 1.1754944e-38, %v458_v28  ;;  %vm457_vm11 = vcmp.eq.f32.partialorder %v456_v34, 8.507059e+37  ;;  %vm2736_vm13 = vmor %vm612_vm12, %vm613_vm10  ;;  %v619_v50 = vor.u32 1.1754944e-38, %v618_v55 }
 0x3af   :  { %v290_v4 = vmul.f32 %v2325_v56, %v289_v0  ;;  %v778_v6 = vand.u32 2147483648, %v2713_v63 }
 0x3b0   :  { %v610_v31 = vmul.f32 %v2711_v59, %v609_v14 }
 0x3b1   :  { %v291_v7 = vadd.f32 %v2325_v56, %v290_v4 }
 0x3b2   :  { %v2329_v8 = vpop.eup %2328  ;;  %v611_v40 = vadd.f32 %v2711_v59, %v610_v31 }
 0x3b3   :  { %v448_v15 = vmul.f32 %v2329_v8, %v431_v62  ;;  %v295_v16 = vsel %vm294_vm1, %v2325_v56, %v291_v7  ;;  %v2718_v21 = vpop.eup %2330  ;;  %vm453_vm5 = vweird.f32 %v2329_v8 }
 0x3b4   :  { %v588_v19 = vpop.xlane.xlu2 %587  ;;  %v300_v20 = vsel %vm297_vm2, %v299_v13, %v295_v16  ;;  %v768_v36 = vmul.f32 %v2718_v21, %v2713_v63  ;;  %vm454_vm9 = vmor %vm452_vm7, %vm453_vm5  ;;  %v615_v54 = vsel %vm2736_vm13, %v2711_v59, %v611_v40  ;;  %vm773_vm2 = vweird.f32 %v2718_v21 }
 0x3b5   :  { %v449_v26 = vsub.f32 1.0, %v448_v15  ;;  %2332 = vrcp.f32 %v588_v19  ;;  %v301_v29 = vmul.f32 %v2679_v11, %v300_v20  ;;  %v603_v53 = vand.u32 2147483648, %v588_v19 }
 0x3b6   :  { %v769_v42 = vsub.f32 1.0, %v768_v36  ;;  %v601_v61 = vand.u32 2147483647, %v588_v19  ;;  %vm597_vm1 = vweird.f32 %v588_v19  ;;  %vm772_vm5 = vweird.f32 %v2713_v63  ;;  %v138_v36 = vld [vmem:[%s3219_s6 + $0x10] sm:$0xff] }
 0x3b7   :  { %v450_v33 = vmul.f32 %v2329_v8, %v449_v26  ;;  %2152 = vmatmul.msk.f32.vlgmr.msrb.gmra.mxu3 %vm194_vm8, %v301_v29  ;;  %v604_v59 = vor.u32 1.1754944e-38, %v603_v53  ;;  %vm774_vm6 = vmor %vm772_vm5, %vm773_vm2  ;;  %v779_v20 = vor.u32 1.1754944e-38, %v778_v6  ;;  %888 = vmatpush.msrb.mxu2 %v138_v36  ;;  %vm860_vm13 = vcmask 130048  }
 0x3b8   :  { %643 = vmatpush.msrb.mxu3 %v2705_v45  ;;  %v770_v56 = vmul.f32 %v2718_v21, %v769_v42  ;;  %vm602_vm4 = vcmp.eq.f32.partialorder %v601_v61, 8.507059e+37 }
 0x3b9   :  { %v451_v37 = vadd.f32 %v2329_v8, %v450_v33 }
 0x3ba   :  { %v771_v1 = vadd.f32 %v2718_v21, %v770_v56 }
 0x3bb   :  { %v2333_v11 = vpop.eup %2332  ;;  %v455_v41 = vsel %vm454_vm9, %v2329_v8, %v451_v37  ;;  %v776_v8 = vand.u32 2147483647, %v2713_v63  ;;  %v137_v37 = vld [vmem:[%s3219_s6 + $0x8] sm:$0xff] }
 0x3bc   :  { %v593_v43 = vmul.f32 %v2333_v11, %v588_v19  ;;  %v748_v44 = vpop.xlane.xlu2 %747  ;;  %v460_v57 = vsel %vm457_vm11, %v459_v39, %v455_v41  ;;  %vm598_vm14 = vweird.f32 %v2333_v11  ;;  %v775_v16 = vsel %vm774_vm6, %v2718_v21, %v771_v1  ;;  %889 = vmatpush.msrb.mxu2 %v137_v37 }
 0x3bd   :  { %2334 = vrcp.f32 %v748_v44  ;;  %v461_v51 = vmul.f32 %v2685_v25, %v460_v57  ;;  %v620_v25 = vsel %vm617_vm15, %v619_v50, %v615_v54  ;;  %vm599_vm3 = vmor %vm597_vm1, %vm598_vm14  ;;  %v763_v15 = vand.u32 2147483648, %v748_v44 }
 0x3be   :  { %v594_v48 = vsub.f32 1.0, %v593_v43  ;;  %v621_v14 = vmul.f32 %v2675_v5, %v620_v25  ;;  %v761_v19 = vand.u32 2147483647, %v748_v44  ;;  %vm777_vm9 = vcmp.eq.f32.partialorder %v776_v8, 8.507059e+37  ;;  %890 = vmatpush.msrb.mxu2 %v136_v38  ;;  %v144_v8 = vld [vmem:[%s3223_s10 + $0x8] sm:$0xff] }
 0x3bf   :  { %2157 = vmatmul.msk.f32.vlgmr.msra.gmra.mxu3 %vm194_vm8, %v446_v49  ;;  %2158 = vmatmul.msk.f32.vlgmr.msrb.gmra.mxu1 %vm194_vm8, %v461_v51  ;;  %vm757_vm10 = vweird.f32 %v748_v44  ;;  %v764_v5 = vor.u32 1.1754944e-38, %v763_v15  ;;  %vm863_vm14 = vcmask 195584   ;;  %v2282_v49 = vld [vmem:[%s3220_s7] ss:$0 sm:$0xff]  ;;  %vm1007_vm6 = vcmask 523264  }
 0x3c0   :  { %v595_v58 = vmul.f32 %v2333_v11, %v594_v48  ;;  %vm762_vm12 = vcmp.eq.f32.partialorder %v761_v19, 8.507059e+37 }
 0x3c2   :  { %v596_v62 = vadd.f32 %v2333_v11, %v595_v58 }
 0x3c3   :  { %v2335_v60 = vpop.eup %2334  ;;  %v809_v0 = vpop.permute.xlu1 %808 }
 0x3c4   :  { %v600_v2 = vsel %vm599_vm3, %v2333_v11, %v596_v62  ;;  %v753_v3 = vmul.f32 %v2335_v60, %v748_v44  ;;  %v783_v4 = vpop.permute.xlu2 %782  ;;  %829 = vmatpush.msrb.mxu1 %v809_v0  ;;  %vm758_vm7 = vweird.f32 %v2335_v60 }
 0x3c5   :  { %v605_v7 = vsel %vm602_vm4, %v604_v59, %v600_v2  ;;  %803 = vmatpush.msra.mxu3 %v783_v4  ;;  %vm759_vm11 = vmor %vm757_vm10, %vm758_vm7 }
 0x3c6   :  { %v754_v9 = vsub.f32 1.0, %v753_v3  ;;  %v606_v13 = vmul.f32 %v2692_v30, %v605_v7  ;;  %v780_v30 = vsel %vm777_vm9, %v779_v20, %v775_v16  ;;  %v145_v7 = vld [vmem:[%s3223_s10 + $0x10] sm:$0xff] }
 0x3c7   :  { %2164 = vmatmul.msk.f32.vlgmr.msra.gmra.mxu1 %vm194_vm8, %v621_v14  ;;  %v781_v21 = vmul.f32 %v2683_v22, %v780_v30 }
 0x3c8   :  { %v755_v17 = vmul.f32 %v2335_v60, %v754_v9  ;;  %2163 = vmatmul.msk.f32.vlgmr.msrb.gmra.mxu3 %vm194_vm8, %v606_v13  ;;  %v143_v9 = vld [vmem:[%s3223_s10] sm:$0xff] }
 0x3ca   :  { %v756_v63 = vadd.f32 %v2335_v60, %v755_v17 }
 0x3cc   :  { %v760_v23 = vsel %vm759_vm11, %v2335_v60, %v756_v63 }
 0x3cd   :  { %v765_v24 = vsel %vm762_vm12, %v764_v5, %v760_v23 }
 0x3ce   :  { %v766_v26 = vmul.f32 %v2696_v32, %v765_v24 }
 0x3cf   :  { %2170 = vmatmul.msk.f32.vlgmr.msrb.gmra.mxu1 %vm194_vm8, %v781_v21 }
 0x3d0   :  { %2169 = vmatmul.msk.f32.vlgmr.msra.gmra.mxu3 %vm194_vm8, %v766_v26 }
 0x408   :  { %v325_v27 = vpop.f32.mrf.mxu3 }
 0x43a   :  { %v351_v28 = vpop.f32.mrf.mxu3 }
 0x43c   :  { %v511_v29 = vpop.f32.mrf.mxu1 }
 0x442   :  { %v485_v31 = vpop.f32.mrf.mxu3 }
 0x443   :  { %836 = vrot.lane.b32.xlu0 %v485_v31, %s3238_s3 }
 0x444   :  { %v671_v33 = vpop.f32.mrf.mxu1 }
 0x445   :  { %846 = vrot.lane.b32.xlu2 %v671_v33, %s3236_s30  ;;  %v2284_v33 = vld [vmem:[%s3222_s9] ss:$0 sm:$0xff] }
 0x44b   :  { %v645_v34 = vpop.f32.mrf.mxu3 }
 0x44c   :  { %844 = vrot.lane.b32.xlu1 %v645_v34, %s3236_s30  ;;  %v831_v22 = vpop.f32.mrf.mxu1 }
 0x453   :  { %v805_v32 = vpop.f32.mrf.mxu3 }
 0x454   :  { %838 = vrot.lane.b32.xlu1 %v511_v29, %s3238_s3  ;;  %852 = vrot.lane.b32.xlu0 %v805_v32, %s3241_s23 }
 0x45c   :  { %854 = vrot.lane.b32.xlu0 %v831_v22, %s3241_s23 }
 0x49f   :  { %v847_v55 = vpop.permute.xlu2 %846 }
 0x4b5   :  { %v837_v39 = vpop.permute.xlu0 %836 }
 0x4b6   :  { %v858_v40 = vsel %vm194_vm8, %v325_v27, %v837_v39  ;;  %v2283_v27 = vld [vmem:[%s3221_s8] ss:$0 sm:$0xff] }
 0x4be   :  { %v845_v11 = vpop.permute.xlu1 %844 }
 0x4bf   :  { %v861_v41 = vsel %vm860_vm13, %v858_v40, %v845_v11  ;;  %v155_v40 = vld [vmem:[%s3225_s12 + $0x38] sm:$0xff] }
 0x4c0   :  { %1022 = vmatpush.msrb.mxu3 %v155_v40 }
 0x4c6   :  { %v853_v42 = vpop.permute.xlu0 %852  ;;  %v839_v44 = vpop.permute.xlu1 %838 }
 0x4c7   :  { %v864_v43 = vsel %vm863_vm14, %v861_v41, %v853_v42  ;;  %v859_v57 = vsel %vm194_vm8, %v351_v28, %v839_v44  ;;  %v154_v41 = vld [vmem:[%s3225_s12 + $0x30] sm:$0xff]  ;;  %v153_v42 = vld [vmem:[%s3225_s12 + $0x28] sm:$0xff]  ;;  %v151_v44 = vld [vmem:[%s3225_s12 + $0x18] sm:$0xff] }
 0x4c8   :  { %2171 = vmatmul.msk.f32.vlgmr.msrb.gmra.mxu2 %vm64_vm0, %v864_v43  ;;  %v862_v46 = vsel %vm860_vm13, %v859_v57, %v847_v55  ;;  %1023 = vmatpush.msrb.mxu3 %v154_v41  ;;  %v152_v43 = vld [vmem:[%s3225_s12 + $0x20] sm:$0xff]  ;;  %v150_v57 = vld [vmem:[%s3225_s12 + $0x10] sm:$0xff]  ;;  %v149_v55 = vld [vmem:[%s3225_s12 + $0x8] sm:$0xff] }
 0x4ca   :  { %1024 = vmatpush.msrb.mxu3 %v153_v42 }
 0x4cc   :  { %1025 = vmatpush.msrb.mxu3 %v152_v43 }
 0x4ce   :  { %v855_v45 = vpop.permute.xlu0 %854  ;;  %1026 = vmatpush.msrb.mxu3 %v151_v44 }
 0x4cf   :  { %v865_v48 = vsel %vm863_vm14, %v862_v46, %v855_v45  ;;  %v148_v45 = vld [vmem:[%s3225_s12] sm:$0xff] }
 0x4d0   :  { %2172 = vmatmul.msk.f32.gmra.mxu2 %vm64_vm0, %v865_v48  ;;  %1027 = vmatpush.msrb.mxu3 %v150_v57  ;;  %v2285_v46 = vld [vmem:[%s3224_s11] ss:$0 sm:$0xff] }
 0x4d2   :  { %1028 = vmatpush.msrb.mxu3 %v149_v55 }
 0x4d4   :  { %1029 = vmatpush.msrb.mxu3 %v148_v45  ;;  %v2287_v45 = vld [vmem:[%s3227_s14] ss:$0 sm:$0xff] }
 0x54b   :  { %v892_v51 = vpop.f32.mrf.mxu2 }
 0x54c   :  { %v893_v54 = vadd.f32 %v2282_v49, %v892_v51 }
 0x54e   :  { %v898_v53 = vadd.f32 %v893_v54, %v2569_v47 }
 0x550   :  { %v900_v56 = vsel %vm64_vm0, %v898_v53, 0.0 }
 0x551   :  { %901 = vadd.xlane.f32.xlu1 %v900_v56 }
 0x553   :  { %v895_v58 = vpop.f32.mrf.mxu2 }
 0x554   :  { %v896_v61 = vadd.f32 %v2282_v49, %v895_v58 }
 0x556   :  { %v899_v50 = vadd.f32 %v896_v61, %v2573_v52  ;;  %v146_v52 = vld [vmem:[%s3223_s10 + $0x18] sm:$0xff] }
 0x557   :  { %975 = vmatpush.msrb.mxu0 %v146_v52 }
 0x558   :  { %v903_v62 = vsel %vm64_vm0, %v899_v50, 0.0 }
 0x559   :  { %904 = vadd.xlane.f32.xlu2 %v903_v62  ;;  %976 = vmatpush.msrb.mxu0 %v145_v7 }
 0x55b   :  { %977 = vmatpush.msrb.mxu0 %v144_v8  ;;  %v2286_v8 = vld [vmem:[%s3226_s13] ss:$0 sm:$0xff] }
 0x55d   :  { %978 = vmatpush.msrb.mxu0 %v143_v9 }
 0x5c4   :  { %v902_v60 = vpop.xlane.xlu1 %901 }
 0x5c5   :  { %v906_v25 = vmul.f32 %v902_v60, %v2543_v10 }
 0x5c7   :  { %v908_v59 = vsub.f32 %v898_v53, %v906_v25 }
 0x5c9   :  { %v910_v0 = vmul.f32 %v908_v59, %v908_v59 }
 0x5cb   :  { %v912_v1 = vsel %vm64_vm0, %v910_v0, 0.0 }
 0x5cc   :  { %913 = vadd.xlane.f32.xlu0 %v912_v1  ;;  %v905_v2 = vpop.xlane.xlu2 %904 }
 0x5cd   :  { %v907_v47 = vmul.f32 %v905_v2, %v2543_v10 }
 0x5cf   :  { %v909_v3 = vsub.f32 %v899_v50, %v907_v47 }
 0x5d1   :  { %v911_v4 = vmul.f32 %v909_v3, %v909_v3 }
 0x5d3   :  { %v915_v6 = vsel %vm64_vm0, %v911_v4, 0.0 }
 0x5d4   :  { %916 = vadd.xlane.f32.xlu1 %v915_v6 }
 0x63f   :  { %v914_v13 = vpop.xlane.xlu0 %913 }
 0x640   :  { %v918_v14 = vmul.f32 %v914_v13, %v2543_v10 }
 0x642   :  { %v920_v15 = vadd.f32 1e-05, %v918_v14 }
 0x644   :  { %2336 = vrsqrt.f32 %v920_v15  ;;  %vm928_vm1 = vweird.f32 %v920_v15 }
 0x647   :  { %v917_v16 = vpop.xlane.xlu1 %916 }
 0x648   :  { %v919_v17 = vmul.f32 %v917_v16, %v2543_v10 }
 0x64a   :  { %v2337_v19 = vpop.eup %2336  ;;  %v921_v20 = vadd.f32 1e-05, %v919_v17 }
 0x64b   :  { %v923_v63 = vmul.f32 %v2337_v19, %v920_v15  ;;  %vm929_vm15 = vweird.f32 %v2337_v19 }
 0x64c   :  { %2338 = vrsqrt.f32 %v921_v20  ;;  %vm930_vm2 = vmor %vm928_vm1, %vm929_vm15  ;;  %vm938_vm4 = vweird.f32 %v921_v20 }
 0x64d   :  { %v924_v30 = vmul.f32 %v2337_v19, %v923_v63 }
 0x64f   :  { %v925_v5 = vmul.f32 0.5, %v924_v30 }
 0x651   :  { %v926_v23 = vsub.f32 1.5, %v925_v5 }
 0x652   :  { %v2339_v24 = vpop.eup %2338 }
 0x653   :  { %v927_v26 = vmul.f32 %v2337_v19, %v926_v23  ;;  %v933_v21 = vmul.f32 %v2339_v24, %v921_v20  ;;  %vm939_vm3 = vweird.f32 %v2339_v24 }
 0x654   :  { %vm940_vm5 = vmor %vm938_vm4, %vm939_vm3 }
 0x655   :  { %v931_v28 = vsel %vm930_vm2, %v2337_v19, %v927_v26  ;;  %v934_v29 = vmul.f32 %v2339_v24, %v933_v21 }
 0x656   :  { %v942_v31 = vmul.f32 %v931_v28, %v908_v59 }
 0x657   :  { %v935_v34 = vmul.f32 0.5, %v934_v29 }
 0x658   :  { %v947_v32 = vmul.f32 %v2283_v27, %v942_v31  ;;  %v2180_v31 = vld [vmem:[%s3217_s4 + $0x38] sm:$0xff] }
 0x659   :  { %v936_v22 = vsub.f32 1.5, %v935_v34  ;;  %1154 = vmatpush.msra.mxu1 %v2180_v31  ;;  %v2178_v34 = vld [vmem:[%s3217_s4 + $0x28] sm:$0xff] }
 0x65a   :  { %v952_v35 = vadd.f32 %v2284_v33, %v947_v32  ;;  %v2177_v32 = vld [vmem:[%s3217_s4 + $0x20] sm:$0xff] }
 0x65b   :  { %v937_v36 = vmul.f32 %v2339_v24, %v936_v22 }
 0x65c   :  { %2173 = vmatmul.msk.f32.vlgmr.msrb.gmra.mxu0 %vm64_vm0, %v952_v35 }
 0x65d   :  { %v941_v37 = vsel %vm940_vm5, %v2339_v24, %v937_v36 }
 0x65e   :  { %v943_v38 = vmul.f32 %v941_v37, %v909_v3 }
 0x660   :  { %v948_v39 = vmul.f32 %v2283_v27, %v943_v38 }
 0x662   :  { %v953_v11 = vadd.f32 %v2284_v33, %v948_v39  ;;  %v2179_v33 = vld [vmem:[%s3217_s4 + $0x30] sm:$0xff] }
 0x663   :  { %1155 = vmatpush.msra.mxu1 %v2179_v33 }
 0x664   :  { %2174 = vmatmul.msk.f32.gmra.mxu0 %vm64_vm0, %v953_v11 }
 0x665   :  { %1156 = vmatpush.msra.mxu1 %v2178_v34 }
 0x667   :  { %1157 = vmatpush.msra.mxu1 %v2177_v32 }
 0x6d9   :  { %v980_v48 = vpop.f32.mrf.mxu0 }
 0x6da   :  { %v981_v49 = vadd.f32 %v2285_v46, %v980_v48 }
 0x6dc   :  { %v988_v51 = vmul.f32 0.044715, %v981_v49  ;;  %v986_v2 = vmul.f32 0.5, %v981_v49 }
 0x6de   :  { %v990_v54 = vmul.f32 %v988_v51, %v981_v49  ;;  %v2288_v51 = vld [vmem:[%s3228_s15] ss:$0 sm:$0xff] }
 0x6e0   :  { %v992_v53 = vmul.f32 %v990_v54, %v981_v49 }
 0x6e1   :  { %v983_v56 = vpop.f32.mrf.mxu0 }
 0x6e2   :  { %v994_v58 = vadd.f32 %v992_v53, %v981_v49  ;;  %v984_v61 = vadd.f32 %v2285_v46, %v983_v56 }
 0x6e4   :  { %v996_v50 = vmul.f32 0.7978846, %v994_v58  ;;  %v989_v62 = vmul.f32 0.044715, %v984_v61  ;;  %v987_v6 = vmul.f32 0.5, %v984_v61 }
 0x6e6   :  { %2340 = vtanh.f32 %v996_v50  ;;  %v991_v60 = vmul.f32 %v989_v62, %v984_v61 }
 0x6e8   :  { %v993_v25 = vmul.f32 %v991_v60, %v984_v61 }
 0x6ea   :  { %v995_v59 = vadd.f32 %v993_v25, %v984_v61 }
 0x6ec   :  { %v2341_v0 = vpop.eup %2340  ;;  %v997_v1 = vmul.f32 0.7978846, %v995_v59  ;;  %v2289_v59 = vld [vmem:[%s3218_s5 + $0x1] ss:$0 sm:$0xff]  ;;  %s3255_s5 = smov 72  }
 0x6ed   :  { %v1000_v47 = vadd.f32 1.0, %v2341_v0 }
 0x6ee   :  { %2342 = vtanh.f32 %v997_v1 }
 0x6ef   :  { %v1002_v3 = vmul.f32 %v1000_v47, %v986_v2 }
 0x6f1   :  { %2175 = vmatmul.msk.f32.vlgmr.msrb.gmra.mxu3 %vm1007_vm6, %v1002_v3 }
 0x6f4   :  { %v2343_v4 = vpop.eup %2342 }
 0x6f5   :  { %v1001_v52 = vadd.f32 1.0, %v2343_v4 }
 0x6f7   :  { %v1003_v7 = vmul.f32 %v1001_v52, %v987_v6 }
 0x6f9   :  { %2176 = vmatmul.msk.f32.gmra.mxu3 %vm1007_vm6, %v1003_v7 }
 0x774   :  { %v1031_v9 = vpop.f32.mrf.mxu3 }
 0x775   :  { %v1032_v13 = vadd.f32 %v2286_v8, %v1031_v9 }
 0x777   :  { %v1037_v14 = vadd.f32 %v1032_v13, %v952_v35 }
 0x779   :  { %v1039_v15 = vsel %vm64_vm0, %v1037_v14, 0.0 }
 0x77a   :  { %1040 = vadd.xlane.f32.xlu2 %v1039_v15 }
 0x77c   :  { %v1034_v16 = vpop.f32.mrf.mxu3 }
 0x77d   :  { %v1035_v17 = vadd.f32 %v2286_v8, %v1034_v16 }
 0x77f   :  { %v1038_v19 = vadd.f32 %v1035_v17, %v953_v11 }
 0x781   :  { %v1042_v20 = vsel %vm64_vm0, %v1038_v19, 0.0 }
 0x782   :  { %1043 = vadd.xlane.f32.xlu0 %v1042_v20 }
 0x7ed   :  { %v1041_v63 = vpop.xlane.xlu2 %1040 }
 0x7ee   :  { %v1045_v30 = vmul.f32 %v1041_v63, %v2543_v10 }
 0x7f0   :  { %v1047_v5 = vsub.f32 %v1037_v14, %v1045_v30 }
 0x7f2   :  { %v1049_v23 = vmul.f32 %v1047_v5, %v1047_v5 }
 0x7f4   :  { %v1051_v24 = vsel %vm64_vm0, %v1049_v23, 0.0 }
 0x7f5   :  { %v1044_v26 = vpop.xlane.xlu0 %1043  ;;  %1052 = vadd.xlane.f32.xlu1 %v1051_v24 }
 0x7f6   :  { %v1046_v21 = vmul.f32 %v1044_v26, %v2543_v10 }
 0x7f8   :  { %v1048_v27 = vsub.f32 %v1038_v19, %v1046_v21 }
 0x7fa   :  { %v1050_v28 = vmul.f32 %v1048_v27, %v1048_v27 }
 0x7fc   :  { %v1054_v29 = vsel %vm64_vm0, %v1050_v28, 0.0 }
 0x7fd   :  { %1055 = vadd.xlane.f32.xlu2 %v1054_v29 }
 0x868   :  { %v1053_v22 = vpop.xlane.xlu1 %1052 }
 0x869   :  { %v1057_v35 = vmul.f32 %v1053_v22, %v2543_v10 }
 0x86b   :  { %v1059_v36 = vadd.f32 1e-05, %v1057_v35 }
 0x86d   :  { %2344 = vrsqrt.f32 %v1059_v36  ;;  %vm1067_vm9 = vweird.f32 %v1059_v36 }
 0x870   :  { %v1056_v37 = vpop.xlane.xlu2 %1055 }
 0x871   :  { %v1058_v38 = vmul.f32 %v1056_v37, %v2543_v10 }
 0x873   :  { %v2345_v39 = vpop.eup %2344  ;;  %v1060_v11 = vadd.f32 1e-05, %v1058_v38 }
 0x874   :  { %v1062_v40 = vmul.f32 %v2345_v39, %v1059_v36  ;;  %vm1068_vm7 = vweird.f32 %v2345_v39 }
 0x875   :  { %2346 = vrsqrt.f32 %v1060_v11  ;;  %vm1069_vm10 = vmor %vm1067_vm9, %vm1068_vm7  ;;  %vm1077_vm12 = vweird.f32 %v1060_v11 }
 0x876   :  { %v1063_v41 = vmul.f32 %v2345_v39, %v1062_v40 }
 0x878   :  { %v1064_v42 = vmul.f32 0.5, %v1063_v41 }
 0x87a   :  { %v1065_v43 = vsub.f32 1.5, %v1064_v42 }
 0x87b   :  { %v2347_v44 = vpop.eup %2346 }
 0x87c   :  { %v1066_v57 = vmul.f32 %v2345_v39, %v1065_v43  ;;  %v1072_v55 = vmul.f32 %v2347_v44, %v1060_v11  ;;  %vm1078_vm11 = vweird.f32 %v2347_v44 }
 0x87d   :  { %vm1079_vm15 = vmor %vm1077_vm12, %vm1078_vm11 }
 0x87e   :  { %v1070_v46 = vsel %vm1069_vm10, %v2345_v39, %v1066_v57  ;;  %v1073_v48 = vmul.f32 %v2347_v44, %v1072_v55 }
 0x87f   :  { %v1081_v49 = vmul.f32 %v1070_v46, %v1047_v5 }
 0x880   :  { %v1074_v54 = vmul.f32 0.5, %v1073_v48 }
 0x881   :  { %v1086_v53 = vmul.f32 %v2287_v45, %v1081_v49 }
 0x882   :  { %v1075_v56 = vsub.f32 1.5, %v1074_v54 }
 0x883   :  { %v2882_v58 = vadd.f32 %v2288_v51, %v1086_v53 }
 0x884   :  { %v1076_v61 = vmul.f32 %v2347_v44, %v1075_v56 }
 0x885   :  { %2205 = vmatmul.msk.f32.vlgmr.msra.gmra.mxu1 %vm64_vm0, %v2882_v58 }
 0x886   :  { %v1080_v50 = vsel %vm1079_vm15, %v2347_v44, %v1076_v61 }
 0x887   :  { %v1082_v62 = vmul.f32 %v1080_v50, %v1048_v27 }
 0x889   :  { %v1087_v60 = vmul.f32 %v2287_v45, %v1082_v62 }
 0x88b   :  { %v2886_v25 = vadd.f32 %v2288_v51, %v1087_v60 }
 0x88d   :  { %2206 = vmatmul.msk.f32.gmra.mxu1 %vm64_vm0, %v2886_v25 }
 0x902   :  { %v1159_v0 = vpop.f32.mrf.mxu1 }
 0x903   :  { %v2893_v1 = vadd.f32 %v2289_v59, %v1159_v0 }
 0x905   :  { %1166 = vrot.lane.b32.xlu0 %v2893_v1, %s2425_s0 }
 0x90a   :  { %v1162_v2 = vpop.f32.mrf.mxu1 }
 0x90b   :  { %v2897_v47 = vadd.f32 %v2289_v59, %v1162_v2 }
 0x90d   :  { %1323 = vrot.lane.b32.xlu0 %v2893_v1, %s2426_s19  ;;  %1353 = vrot.lane.b32.xlu2 %v2897_v47, %s2427_s1  ;;  %v2961_v51 = vpack.i.bf16 %v2897_v47, %v2893_v1 }
 0x90e   :  { %1193 = vrot.lane.b32.xlu1 %v2897_v47, %s2425_s0  ;;  %s3256_s0 = smov 64  }
 0x915   :  { %1351 = vrot.lane.b32.xlu0 %v2897_v47, %s2426_s19  ;;  %1513 = vrot.lane.b32.xlu2 %v2897_v47, %s2431_s2  ;;  %s3257_s19 = smov 40  }
 0x916   :  { %1325 = vrot.lane.b32.xlu1 %v2893_v1, %s2427_s1  ;;  %s3258_s1 = smov 56  }
 0x91d   :  { %1485 = vrot.lane.b32.xlu0 %v2893_v1, %s2431_s2  ;;  %1483 = vrot.lane.b32.xlu2 %v2893_v1, %s2429_s21  ;;  %s3265_s2 = smov 16  }
 0x91e   :  { %1511 = vrot.lane.b32.xlu1 %v2897_v47, %s2429_s21  ;;  %s3264_s21 = smov 8  }
 0x925   :  { %1671 = vrot.lane.b32.xlu0 %v2897_v47, %s2428_s20  ;;  %1645 = vrot.lane.b32.xlu2 %v2893_v1, %s3255_s5 }
 0x926   :  { %1673 = vrot.lane.b32.xlu1 %v2897_v47, %s3255_s5 }
 0x92e   :  { %1643 = vrot.lane.b32.xlu1 %v2893_v1, %s2428_s20  ;;  %s3259_s20 = smov 48  }
 0x967   :  { %v1354_v3 = vpop.permute.xlu2 %1353 }
 0x968   :  { %2215 = vmatpush.xpose.msk.msra.mxu3 %vm194_vm8, %v1354_v3 }
 0x96f   :  { %v1514_v4 = vpop.permute.xlu2 %1513 }
 0x970   :  { %2221 = vmatpush.xpose.msk.msrb.mxu3 %vm194_vm8, %v1514_v4 }
 0x977   :  { %v1167_v6 = vpop.permute.xlu0 %1166  ;;  %v1484_v8 = vpop.permute.xlu2 %1483 }
 0x978   :  { %2207 = vmatpush.xpose.msk.msra.mxu2 %vm194_vm8, %v1167_v6 }
 0x97b   :  { %2208 = vmatmul.msk.f32.vlgmr.msra.gmra.mxu2 %vm194_vm8, %v2893_v1 }
 0x97f   :  { %v1324_v52 = vpop.permute.xlu0 %1323  ;;  %v1646_v15 = vpop.permute.xlu2 %1645 }
 0x980   :  { %v1194_v7 = vpop.permute.xlu1 %1193 }
 0x981   :  { %2209 = vmatpush.xpose.msk.msra.mxu0 %vm194_vm8, %v1194_v7 }
 0x984   :  { %2210 = vmatmul.msk.f32.vlgmr.msra.gmra.mxu0 %vm194_vm8, %v2897_v47 }
 0x987   :  { %v1352_v9 = vpop.permute.xlu0 %1351 }
 0x988   :  { %v1326_v13 = vpop.permute.xlu1 %1325  ;;  %2216 = vmatmul.msk.f32.vlgmr.msra.gmra.mxu3 %vm194_vm8, %v1352_v9 }
 0x989   :  { %2213 = vmatpush.xpose.msk.msrb.mxu0 %vm194_vm8, %v1326_v13 }
 0x98c   :  { %2214 = vmatmul.msk.f32.vlgmr.msrb.gmra.mxu0 %vm194_vm8, %v1324_v52 }
 0x98f   :  { %v1486_v14 = vpop.permute.xlu0 %1485 }
 0x990   :  { %v1512_v16 = vpop.permute.xlu1 %1511  ;;  %2219 = vmatpush.xpose.msk.msra.mxu0 %vm194_vm8, %v1486_v14 }
 0x991   :  { %2222 = vmatmul.msk.f32.vlgmr.msrb.gmra.mxu3 %vm194_vm8, %v1512_v16 }
 0x994   :  { %2225 = vmatpush.xpose.msk.msrb.mxu0 %vm194_vm8, %v1646_v15 }
 0x995   :  { %2220 = vmatmul.msk.f32.vlgmr.msra.gmra.mxu0 %vm194_vm8, %v1484_v8 }
 0x997   :  { %v1672_v19 = vpop.permute.xlu0 %1671 }
 0x998   :  { %v1674_v17 = vpop.permute.xlu1 %1673 }
 0x999   :  { %2227 = vmatpush.xpose.msk.msra.mxu3 %vm194_vm8, %v1674_v17 }
 0x99c   :  { %2228 = vmatmul.msk.f32.vlgmr.msra.gmra.mxu3 %vm194_vm8, %v1672_v19 }
 0x9a0   :  { %v1644_v20 = vpop.permute.xlu1 %1643 }
 0x9a1   :  { %2226 = vmatmul.msk.f32.vlgmr.msrb.gmra.mxu0 %vm194_vm8, %v1644_v20 }
 0x9fe   :  { %v1189_v63 = vpop.f32.mrf.mxu2 }
 0x9ff   :  { %v1219_v30 = vmul.f32 0.35355338, %v1189_v63 }
 0xa01   :  { %v1216_v5 = vpop.f32.mrf.mxu0  ;;  %v1221_v23 = vadd.f32 %v1219_v30, %v2633_v12 }
 0xa02   :  { %v1220_v24 = vmul.f32 0.35355338, %v1216_v5 }
 0xa03   :  { %v1223_v26 = vsel %vm194_vm8, %v1221_v23, -inf }
 0xa04   :  { %1224 = vmax.xlane.f32.xlu0 %v1223_v26  ;;  %v1222_v21 = vadd.f32 %v1220_v24, %v2637_v18 }
 0xa06   :  { %v1226_v27 = vsel %vm194_vm8, %v1222_v21, -inf }
 0xa07   :  { %1227 = vmax.xlane.f32.xlu2 %v1226_v27 }
 0xa09   :  { %v1348_v28 = vpop.f32.mrf.mxu0 }
 0xa0a   :  { %v1379_v29 = vmul.f32 0.35355338, %v1348_v28 }
 0xa0b   :  { %v1376_v31 = vpop.f32.mrf.mxu3 }
 0xa0c   :  { %v1380_v33 = vmul.f32 0.35355338, %v1376_v31  ;;  %v1381_v34 = vadd.f32 %v1379_v29, %v2633_v12 }
 0xa0e   :  { %v1383_v32 = vsel %vm194_vm8, %v1381_v34, -inf  ;;  %v1382_v22 = vadd.f32 %v1380_v33, %v2637_v18 }
 0xa0f   :  { %1384 = vmax.xlane.f32.xlu1 %v1383_v32 }
 0xa10   :  { %v1386_v35 = vsel %vm194_vm8, %v1382_v22, -inf }
 0xa11   :  { %1387 = vmax.xlane.f32.xlu0 %v1386_v35 }
 0xa12   :  { %v1508_v36 = vpop.f32.mrf.mxu0 }
 0xa13   :  { %v1539_v37 = vmul.f32 0.35355338, %v1508_v36 }
 0xa14   :  { %v1536_v38 = vpop.f32.mrf.mxu3 }
 0xa15   :  { %v1541_v39 = vadd.f32 %v1539_v37, %v2633_v12  ;;  %v1540_v11 = vmul.f32 0.35355338, %v1536_v38 }
 0xa17   :  { %v1543_v40 = vsel %vm194_vm8, %v1541_v39, -inf  ;;  %v1542_v41 = vadd.f32 %v1540_v11, %v2637_v18 }
 0xa18   :  { %1544 = vmax.xlane.f32.xlu2 %v1543_v40 }
 0xa19   :  { %v1546_v42 = vsel %vm194_vm8, %v1542_v41, -inf }
 0xa1a   :  { %1547 = vmax.xlane.f32.xlu1 %v1546_v42 }
 0xa1e   :  { %v1668_v43 = vpop.f32.mrf.mxu0 }
 0xa1f   :  { %v1699_v44 = vmul.f32 0.35355338, %v1668_v43  ;;  %v1696_v57 = vpop.f32.mrf.mxu3 }
 0xa20   :  { %v1700_v55 = vmul.f32 0.35355338, %v1696_v57 }
 0xa21   :  { %v1701_v45 = vadd.f32 %v1699_v44, %v2633_v12 }
 0xa22   :  { %v1702_v46 = vadd.f32 %v1700_v55, %v2637_v18 }
 0xa23   :  { %v1703_v48 = vsel %vm194_vm8, %v1701_v45, -inf }
 0xa24   :  { %1704 = vmax.xlane.f32.xlu0 %v1703_v48  ;;  %v1706_v49 = vsel %vm194_vm8, %v1702_v46, -inf }
 0xa25   :  { %1707 = vmax.xlane.f32.xlu2 %v1706_v49 }
 0xa33   :  { %2260 = vrot.lane.b32.xlu1 %v2961_v51, %s3256_s0 }
 0xa77   :  { %v1225_v54 = vpop.xlane.xlu0 %1224 }
 0xa78   :  { %v1229_v53 = vsub.f32 %v1221_v23, %v1225_v54 }
 0xa7a   :  { %v1231_v56 = vmul.f32 1.442695, %v1229_v53  ;;  %v1228_v61 = vpop.xlane.xlu2 %1227 }
 0xa7b   :  { %v1230_v12 = vsub.f32 %v1222_v21, %v1228_v61 }
 0xa7c   :  { %2348 = vpow2.f32 %v1231_v56 }
 0xa7d   :  { %v1233_v18 = vmul.f32 1.442695, %v1230_v12 }
 0xa7f   :  { %2350 = vpow2.f32 %v1233_v18 }
 0xa82   :  { %v2965_v50 = vpop.eup %2348  ;;  %v1385_v62 = vpop.xlane.xlu1 %1384 }
 0xa83   :  { %v1389_v60 = vsub.f32 %v1381_v34, %v1385_v62  ;;  %v1235_v59 = vsel %vm194_vm8, %v2965_v50, 0.0 }
 0xa84   :  { %v1388_v0 = vpop.xlane.xlu0 %1387  ;;  %1236 = vadd.xlane.f32.xlu1 %v1235_v59 }
 0xa85   :  { %v2969_v1 = vpop.eup %2350  ;;  %v1391_v2 = vmul.f32 1.442695, %v1389_v60  ;;  %v1390_v47 = vsub.f32 %v1382_v22, %v1388_v0 }
 0xa86   :  { %v1238_v3 = vsel %vm194_vm8, %v2969_v1, 0.0 }
 0xa87   :  { %2352 = vpow2.f32 %v1391_v2  ;;  %v1393_v4 = vmul.f32 1.442695, %v1390_v47  ;;  %1239 = vadd.xlane.f32.xlu0 %v1238_v3 }
 0xa89   :  { %2354 = vpow2.f32 %v1393_v4 }
 0xa8b   :  { %v1545_v6 = vpop.xlane.xlu2 %1544 }
 0xa8c   :  { %v1549_v52 = vsub.f32 %v1541_v39, %v1545_v6 }
 0xa8d   :  { %v2973_v7 = vpop.eup %2352  ;;  %v1548_v9 = vpop.xlane.xlu1 %1547 }
 0xa8e   :  { %v1551_v8 = vmul.f32 1.442695, %v1549_v52  ;;  %v1550_v13 = vsub.f32 %v1542_v41, %v1548_v9  ;;  %v1395_v14 = vsel %vm194_vm8, %v2973_v7, 0.0 }
 0xa8f   :  { %v2977_v15 = vpop.eup %2354  ;;  %1396 = vadd.xlane.f32.xlu2 %v1395_v14 }
 0xa90   :  { %2356 = vpow2.f32 %v1551_v8  ;;  %v1553_v16 = vmul.f32 1.442695, %v1550_v13  ;;  %v1398_v17 = vsel %vm194_vm8, %v2977_v15, 0.0 }
 0xa91   :  { %1399 = vadd.xlane.f32.xlu1 %v1398_v17 }
 0xa92   :  { %2358 = vpow2.f32 %v1553_v16 }
 0xa96   :  { %v2981_v19 = vpop.eup %2356 }
 0xa97   :  { %v1555_v20 = vsel %vm194_vm8, %v2981_v19, 0.0  ;;  %v1705_v63 = vpop.xlane.xlu0 %1704 }
 0xa98   :  { %1556 = vadd.xlane.f32.xlu0 %v1555_v20  ;;  %v2985_v30 = vpop.eup %2358  ;;  %v1709_v5 = vsub.f32 %v1701_v45, %v1705_v63  ;;  %v1708_v23 = vpop.xlane.xlu2 %1707 }
 0xa99   :  { %v1710_v24 = vsub.f32 %v1702_v46, %v1708_v23  ;;  %v1558_v26 = vsel %vm194_vm8, %v2985_v30, 0.0 }
 0xa9a   :  { %v1711_v21 = vmul.f32 1.442695, %v1709_v5  ;;  %1559 = vadd.xlane.f32.xlu2 %v1558_v26 }
 0xa9b   :  { %v1713_v27 = vmul.f32 1.442695, %v1710_v24 }
 0xa9c   :  { %2360 = vpow2.f32 %v1711_v21 }
 0xa9d   :  { %2362 = vpow2.f32 %v1713_v27 }
 0xaa2   :  { %v2989_v28 = vpop.eup %2360 }
 0xaa3   :  { %v2991_v29 = vpop.eup %2362  ;;  %v1715_v31 = vsel %vm194_vm8, %v2989_v28, 0.0 }
 0xaa4   :  { %1716 = vadd.xlane.f32.xlu0 %v1715_v31  ;;  %v1718_v33 = vsel %vm194_vm8, %v2991_v29, 0.0 }
 0xaa5   :  { %1719 = vadd.xlane.f32.xlu2 %v1718_v33  ;;  %v2261_v34 = vpop.permute.xlu1 %2260 }
 0xaa6   :  { %v2263_v32 = vunpack.i.h.bf16 %v2261_v34  ;;  %v2262_v22 = vunpack.i.l.bf16 %v2261_v34 }
 0xaa8   :  { %1292 = vmatpush.msrb.mxu1 %v2262_v22  ;;  %1318 = vmatpush.msrb.mxu2 %v2263_v32 }
 0xaaa   :  { %2275 = vrot.lane.b32.xlu1 %v2961_v51, %s3257_s19 }
 0xab8   :  { %2265 = vrot.lane.b32.xlu0 %v2961_v51, %s3258_s1 }
 0xabd   :  { %2270 = vrot.lane.b32.xlu2 %v2961_v51, %s3259_s20 }
 0xaf7   :  { %v1237_v35 = vpop.xlane.xlu1 %1236 }
 0xaf8   :  { %2364 = vrcp.f32 %v1237_v35  ;;  %v1252_v40 = vand.u32 2147483648, %v1237_v35  ;;  %v1250_v43 = vand.u32 2147483647, %v1237_v35  ;;  %vm1246_vm2 = vweird.f32 %v1237_v35 }
 0xafa   :  { %v1240_v36 = vpop.xlane.xlu0 %1239  ;;  %v1253_v45 = vor.u32 1.1754944e-38, %v1252_v40  ;;  %vm1251_vm5 = vcmp.eq.f32.partialorder %v1250_v43, 8.507059e+37 }
 0xafb   :  { %2366 = vrcp.f32 %v1240_v36  ;;  %v1267_v55 = vand.u32 2147483648, %v1240_v36  ;;  %v1265_v48 = vand.u32 2147483647, %v1240_v36  ;;  %vm1261_vm7 = vweird.f32 %v1240_v36 }
 0xafd   :  { %v1268_v53 = vor.u32 1.1754944e-38, %v1267_v55  ;;  %vm1266_vm10 = vcmp.eq.f32.partialorder %v1265_v48, 8.507059e+37 }
 0xafe   :  { %v2365_v37 = vpop.eup %2364 }
 0xaff   :  { %v1242_v38 = vmul.f32 %v2365_v37, %v1237_v35  ;;  %vm1247_vm1 = vweird.f32 %v2365_v37 }
 0xb00   :  { %vm1248_vm3 = vmor %vm1246_vm2, %vm1247_vm1 }
 0xb01   :  { %v2367_v39 = vpop.eup %2366  ;;  %v1243_v11 = vsub.f32 1.0, %v1242_v38 }
 0xb02   :  { %v1257_v41 = vmul.f32 %v2367_v39, %v1240_v36  ;;  %vm1262_vm4 = vweird.f32 %v2367_v39  ;;  %v1397_v56 = vpop.xlane.xlu2 %1396 }
 0xb03   :  { %v1244_v42 = vmul.f32 %v2365_v37, %v1243_v11  ;;  %vm1263_vm9 = vmor %vm1261_vm7, %vm1262_vm4  ;;  %2368 = vrcp.f32 %v1397_v56  ;;  %v1412_v24 = vand.u32 2147483648, %v1397_v56  ;;  %vm1406_vm15 = vweird.f32 %v1397_v56 }
 0xb04   :  { %v1258_v44 = vsub.f32 1.0, %v1257_v41  ;;  %v1400_v18 = vpop.xlane.xlu1 %1399  ;;  %v1410_v27 = vand.u32 2147483647, %v1397_v56 }
 0xb05   :  { %v1245_v57 = vadd.f32 %v2365_v37, %v1244_v42  ;;  %2370 = vrcp.f32 %v1400_v18  ;;  %v1427_v31 = vand.u32 2147483648, %v1400_v18  ;;  %vm1421_vm2 = vweird.f32 %v1400_v18 }
 0xb06   :  { %v1259_v46 = vmul.f32 %v2367_v39, %v1258_v44  ;;  %v1425_v33 = vand.u32 2147483647, %v1400_v18  ;;  %v1413_v35 = vor.u32 1.1754944e-38, %v1412_v24  ;;  %vm1411_vm4 = vcmp.eq.f32.partialorder %v1410_v27, 8.507059e+37 }
 0xb07   :  { %v1249_v49 = vsel %vm1248_vm3, %v2365_v37, %v1245_v57 }
 0xb08   :  { %v1254_v51 = vsel %vm1251_vm5, %v1253_v45, %v1249_v49  ;;  %v1260_v54 = vadd.f32 %v2367_v39, %v1259_v46  ;;  %vm1426_vm5 = vcmp.eq.f32.partialorder %v1425_v33, 8.507059e+37 }
 0xb09   :  { %v1255_v61 = vmul.f32 %v2965_v50, %v1254_v51  ;;  %v2369_v2 = vpop.eup %2368 }
 0xb0a   :  { %v1264_v12 = vsel %vm1263_vm9, %v2367_v39, %v1260_v54  ;;  %v1402_v50 = vmul.f32 %v2369_v2, %v1397_v56  ;;  %vm1407_vm11 = vweird.f32 %v2369_v2  ;;  %v1428_v39 = vor.u32 1.1754944e-38, %v1427_v31 }
 0xb0b   :  { %v1269_v62 = vsel %vm1266_vm10, %v1268_v53, %v1264_v12  ;;  %2211 = vmatmul.msk.f32.vlgmr.msrb.gmra.mxu1 %vm194_vm8, %v1255_v61  ;;  %v3007_v59 = vpop.xlane.xlu0 %1556  ;;  %v2371_v47 = vpop.eup %2370  ;;  %vm1408_vm1 = vmor %vm1406_vm15, %vm1407_vm11 }
 0xb0c   :  { %v1270_v60 = vmul.f32 %v2969_v1, %v1269_v62  ;;  %2372 = vrcp.f32 %v3007_v59  ;;  %v1417_v3 = vmul.f32 %v2371_v47, %v1400_v18  ;;  %v1403_v6 = vsub.f32 1.0, %v1402_v50 }
 0xb0d   :  { %v3009_v0 = vpop.xlane.xlu2 %1559  ;;  %vm1422_vm12 = vweird.f32 %v2371_v47  ;;  %vm1566_vm10 = vweird.f32 %v3007_v59  ;;  %v1572_v43 = vand.u32 2147483648, %v3007_v59  ;;  %v1570_v53 = vand.u32 2147483647, %v3007_v59 }
 0xb0e   :  { %2212 = vmatmul.msk.f32.vlgmr.msrb.gmra.mxu2 %vm194_vm8, %v1270_v60  ;;  %2374 = vrcp.f32 %v3009_v0  ;;  %v1418_v8 = vsub.f32 1.0, %v1417_v3  ;;  %v1404_v13 = vmul.f32 %v2369_v2, %v1403_v6  ;;  %vm1423_vm3 = vmor %vm1421_vm2, %vm1422_vm12  ;;  %vm1581_vm12 = vweird.f32 %v3009_v0 }
 0xb0f   :  { %v1587_v48 = vand.u32 2147483648, %v3009_v0  ;;  %v1585_v61 = vand.u32 2147483647, %v3009_v0 }
 0xb10   :  { %v1419_v17 = vmul.f32 %v2371_v47, %v1418_v8  ;;  %v1405_v20 = vadd.f32 %v2369_v2, %v1404_v13 }
 0xb11   :  { %v1588_v3 = vor.u32 1.1754944e-38, %v1587_v48  ;;  %vm1586_vm2 = vcmp.eq.f32.partialorder %v1585_v61, 8.507059e+37  ;;  %v2290_v48 = vld [vmem:[%s3220_s7 + $0x1] ss:$0 sm:$0xff] }
 0xb12   :  { %v3013_v4 = vpop.eup %2372  ;;  %v1420_v26 = vadd.f32 %v2371_v47, %v1419_v17  ;;  %v1409_v34 = vsel %vm1408_vm1, %v2369_v2, %v1405_v20  ;;  %vm1571_vm1 = vcmp.eq.f32.partialorder %v1570_v53, 8.507059e+37 }
 0xb13   :  { %v1562_v14 = vmul.f32 %v3013_v4, %v3007_v59  ;;  %v1414_v11 = vsel %vm1411_vm4, %v1413_v35, %v1409_v34  ;;  %vm1567_vm7 = vweird.f32 %v3013_v4  ;;  %v2184_v35 = vld [vmem:[%s3219_s6 + $0x30] sm:$0xff] }
 0xb14   :  { %v3017_v1 = vpop.eup %2374  ;;  %v1424_v36 = vsel %vm1423_vm3, %v2371_v47, %v1420_v26  ;;  %vm3043_vm11 = vmor %vm1566_vm10, %vm1567_vm7  ;;  %v1415_v12 = vmul.f32 %v2973_v7, %v1414_v11 }
 0xb15   :  { %v1577_v16 = vmul.f32 %v3017_v1, %v3009_v0  ;;  %v1563_v63 = vsub.f32 1.0, %v1562_v14  ;;  %v1429_v40 = vsel %vm1426_vm5, %v1428_v39, %v1424_v36  ;;  %vm1582_vm9 = vweird.f32 %v3017_v1  ;;  %v2183_v36 = vld [vmem:[%s3219_s6 + $0x28] sm:$0xff] }
 0xb16   :  { %vm3050_vm15 = vmor %vm1581_vm12, %vm1582_vm9  ;;  %v1430_v18 = vmul.f32 %v2977_v15, %v1429_v40  ;;  %v1573_v15 = vor.u32 1.1754944e-38, %v1572_v43 }
 0xb17   :  { %v3015_v52 = vpop.xlane.xlu0 %1716  ;;  %v1578_v5 = vsub.f32 1.0, %v1577_v16  ;;  %v1564_v32 = vmul.f32 %v3013_v4, %v1563_v63 }
 0xb18   :  { %v3019_v9 = vpop.xlane.xlu2 %1719  ;;  %2376 = vrcp.f32 %v3015_v52  ;;  %vm1726_vm5 = vweird.f32 %v3015_v52  ;;  %v1730_v13 = vand.u32 2147483647, %v3015_v52  ;;  %v1732_v14 = vand.u32 2147483648, %v3015_v52 }
 0xb19   :  { %2378 = vrcp.f32 %v3019_v9  ;;  %v1579_v22 = vmul.f32 %v3017_v1, %v1578_v5  ;;  %v1565_v41 = vadd.f32 %v3013_v4, %v1564_v32  ;;  %v1747_v16 = vand.u32 2147483648, %v3019_v9 }
 0xb1a   :  { %vm1741_vm9 = vweird.f32 %v3019_v9  ;;  %v1745_v17 = vand.u32 2147483647, %v3019_v9 }
 0xb1b   :  { %v1580_v42 = vadd.f32 %v3017_v1, %v1579_v22  ;;  %v1569_v62 = vsel %vm3043_vm11, %v3013_v4, %v1565_v41  ;;  %v1748_v26 = vor.u32 1.1754944e-38, %v1747_v16  ;;  %vm1731_vm11 = vcmp.eq.f32.partialorder %v1730_v13, 8.507059e+37 }
 0xb1c   :  { %v2276_v49 = vpop.permute.xlu1 %2275  ;;  %v1574_v4 = vsel %vm1571_vm1, %v1573_v15, %v1569_v62  ;;  %vm1746_vm12 = vcmp.eq.f32.partialorder %v1745_v17, 8.507059e+37 }
 0xb1d   :  { %v1584_v60 = vsel %vm3050_vm15, %v3017_v1, %v1580_v42  ;;  %v2278_v50 = vunpack.i.h.bf16 %v2276_v49  ;;  %v2277_v7 = vunpack.i.l.bf16 %v2276_v49  ;;  %v1575_v20 = vmul.f32 %v2981_v19, %v1574_v4  ;;  %v2190_v4 = vld [vmem:[%s3223_s10 + $0x28] sm:$0xff] }
 0xb1e   :  { %v3027_v23 = vpop.eup %2376  ;;  %v1589_v6 = vsel %vm1586_vm2, %v1588_v3, %v1584_v60  ;;  %v2191_v3 = vld [vmem:[%s3223_s10 + $0x30] sm:$0xff] }
 0xb1f   :  { %v3029_v21 = vpop.eup %2378  ;;  %v1722_v37 = vmul.f32 %v3027_v23, %v3015_v52  ;;  %vm1727_vm3 = vweird.f32 %v3027_v23  ;;  %v1590_v63 = vmul.f32 %v2985_v30, %v1589_v6  ;;  %v1733_v52 = vor.u32 1.1754944e-38, %v1732_v14  ;;  %v2189_v6 = vld [vmem:[%s3223_s10 + $0x20] sm:$0xff] }
 0xb20   :  { %v1737_v38 = vmul.f32 %v3029_v21, %v3019_v9  ;;  %v2271_v55 = vpop.permute.xlu2 %2270  ;;  %vm1742_vm4 = vweird.f32 %v3029_v21  ;;  %vm1728_vm7 = vmor %vm1726_vm5, %vm1727_vm3 }
 0xb21   :  { %v1723_v44 = vsub.f32 1.0, %v1722_v37  ;;  %v2273_v2 = vunpack.i.h.bf16 %v2271_v55  ;;  %v2272_v59 = vunpack.i.l.bf16 %v2271_v55  ;;  %vm1743_vm10 = vmor %vm1741_vm9, %vm1742_vm4  ;;  %v2182_v37 = vld [vmem:[%s3219_s6 + $0x20] sm:$0xff] }
 0xb22   :  { %v1738_v57 = vsub.f32 1.0, %v1737_v38 }
 0xb23   :  { %v1724_v47 = vmul.f32 %v3027_v23, %v1723_v44 }
 0xb24   :  { %v1739_v0 = vmul.f32 %v3029_v21, %v1738_v57 }
 0xb25   :  { %v1725_v1 = vadd.f32 %v3027_v23, %v1724_v47 }
 0xb26   :  { %v1740_v8 = vadd.f32 %v3029_v21, %v1739_v0 }
 0xb27   :  { %v1729_v5 = vsel %vm1728_vm7, %v3027_v23, %v1725_v1 }
 0xb28   :  { %v1744_v24 = vsel %vm1743_vm10, %v3029_v21, %v1740_v8  ;;  %v1734_v27 = vsel %vm1731_vm11, %v1733_v52, %v1729_v5  ;;  %vm2070_vm10 = vcmask 1041409   ;;  %vm2096_vm11 = vcmask 254976  }
 0xb29   :  { %v1749_v31 = vsel %vm1746_vm12, %v1748_v26, %v1744_v24  ;;  %v1735_v9 = vmul.f32 %v2989_v28, %v1734_v27 }
 0xb2a   :  { %v2266_v45 = vpop.permute.xlu0 %2265  ;;  %v1750_v19 = vmul.f32 %v2991_v29, %v1749_v31  ;;  %v2185_v29 = vld [vmem:[%s3219_s6 + $0x38] sm:$0xff] }
 0xb2b   :  { %v2268_v51 = vunpack.i.h.bf16 %v2266_v45  ;;  %v2267_v54 = vunpack.i.l.bf16 %v2266_v45  ;;  %1854 = vmatpush.msra.mxu0 %v2185_v29 }
 0xb2d   :  { %1452 = vmatpush.msra.mxu1 %v2267_v54  ;;  %1478 = vmatpush.msra.mxu2 %v2268_v51 }
 0xb2e   :  { %2217 = vmatmul.msk.f32.vlgmr.msra.gmra.mxu1 %vm194_vm8, %v1415_v12  ;;  %2218 = vmatmul.msk.f32.vlgmr.msra.gmra.mxu2 %vm194_vm8, %v1430_v18 }
 0xb2f   :  { %1612 = vmatpush.msrb.mxu1 %v2272_v59  ;;  %1638 = vmatpush.msrb.mxu2 %v2273_v2 }
 0xb30   :  { %1855 = vmatpush.msra.mxu0 %v2184_v35 }
 0xb31   :  { %1772 = vmatpush.msra.mxu1 %v2277_v7  ;;  %1798 = vmatpush.msra.mxu2 %v2278_v50 }
 0xb32   :  { %1856 = vmatpush.msra.mxu0 %v2183_v36 }
 0xb34   :  { %1857 = vmatpush.msra.mxu0 %v2182_v37 }
 0xb36   :  { %2223 = vmatmul.msk.f32.vlgmr.msrb.gmra.mxu1 %vm194_vm8, %v1575_v20  ;;  %2224 = vmatmul.msk.f32.vlgmr.msrb.gmra.mxu2 %vm194_vm8, %v1590_v63 }
 0xb3e   :  { %2229 = vmatmul.msk.f32.vlgmr.msra.gmra.mxu1 %vm194_vm8, %v1735_v9  ;;  %2230 = vmatmul.msk.f32.vlgmr.msra.gmra.mxu2 %vm194_vm8, %v1750_v19  ;;  %v2291_v9 = vld [vmem:[%s3221_s8 + $0x1] ss:$0 sm:$0xff] }
 0xb88   :  { %v1294_v30 = vpop.f32.mrf.mxu1 }
 0xb91   :  { %v1320_v23 = vpop.f32.mrf.mxu2 }
 0xbab   :  { %v1454_v21 = vpop.f32.mrf.mxu1 }
 0xbac   :  { %1805 = vrot.lane.b32.xlu0 %v1454_v21, %s3264_s21  ;;  %v2292_v21 = vld [vmem:[%s3222_s9 + $0x1] ss:$0 sm:$0xff] }
 0xbb1   :  { %v1480_v33 = vpop.f32.mrf.mxu2 }
 0xbb3   :  { %v1614_v34 = vpop.f32.mrf.mxu1 }
 0xbb4   :  { %1807 = vrot.lane.b32.xlu0 %v1480_v33, %s3264_s21  ;;  %1813 = vrot.lane.b32.xlu1 %v1614_v34, %s3265_s2 }
 0xbb9   :  { %v1640_v32 = vpop.f32.mrf.mxu2 }
 0xbbb   :  { %v1774_v22 = vpop.f32.mrf.mxu1 }
 0xbbc   :  { %1815 = vrot.lane.b32.xlu1 %v1640_v32, %s3265_s2  ;;  %1821 = vrot.lane.b32.xlu2 %v1774_v22, %s3266_s27 }
 0xbc1   :  { %v1800_v28 = vpop.f32.mrf.mxu2 }
 0xbc4   :  { %1823 = vrot.lane.b32.xlu2 %v1800_v28, %s3266_s27 }
 0xc16   :  { %v1822_v39 = vpop.permute.xlu2 %1821 }
 0xc1e   :  { %v1806_v38 = vpop.permute.xlu0 %1805  ;;  %v1824_v55 = vpop.permute.xlu2 %1823 }
 0xc1f   :  { %v1827_v11 = vsel %vm194_vm8, %v1294_v30, %v1806_v38  ;;  %v2201_v38 = vld [vmem:[%s3225_s12 + $0x78] sm:$0xff] }
 0xc20   :  { %1988 = vmatpush.msrb.mxu1 %v2201_v38 }
 0xc26   :  { %v1814_v40 = vpop.permute.xlu1 %1813  ;;  %v1808_v43 = vpop.permute.xlu0 %1807 }
 0xc27   :  { %v1829_v41 = vsel %vm860_vm13, %v1827_v11, %v1814_v40  ;;  %v1828_v44 = vsel %vm194_vm8, %v1320_v23, %v1808_v43  ;;  %v2199_v11 = vld [vmem:[%s3225_s12 + $0x68] sm:$0xff]  ;;  %v2198_v40 = vld [vmem:[%s3225_s12 + $0x60] sm:$0xff] }
 0xc28   :  { %v1831_v42 = vsel %vm863_vm14, %v1829_v41, %v1822_v39  ;;  %v2200_v39 = vld [vmem:[%s3225_s12 + $0x70] sm:$0xff]  ;;  %v2197_v41 = vld [vmem:[%s3225_s12 + $0x58] sm:$0xff]  ;;  %v2195_v43 = vld [vmem:[%s3225_s12 + $0x48] sm:$0xff] }
 0xc29   :  { %2231 = vmatmul.msk.f32.vlgmr.msra.gmra.mxu0 %vm64_vm0, %v1831_v42  ;;  %1989 = vmatpush.msrb.mxu1 %v2200_v39  ;;  %v2196_v42 = vld [vmem:[%s3225_s12 + $0x50] sm:$0xff] }
 0xc2b   :  { %1990 = vmatpush.msrb.mxu1 %v2199_v11 }
 0xc2d   :  { %1991 = vmatpush.msrb.mxu1 %v2198_v40 }
 0xc2e   :  { %v1816_v57 = vpop.permute.xlu1 %1815 }
 0xc2f   :  { %v1830_v45 = vsel %vm860_vm13, %v1828_v44, %v1816_v57  ;;  %1992 = vmatpush.msrb.mxu1 %v2197_v41  ;;  %v2194_v44 = vld [vmem:[%s3225_s12 + $0x40] sm:$0xff] }
 0xc30   :  { %v1832_v46 = vsel %vm863_vm14, %v1830_v45, %v1824_v55  ;;  %v2293_v57 = vld [vmem:[%s3224_s11 + $0x1] ss:$0 sm:$0xff] }
 0xc31   :  { %2232 = vmatmul.msk.f32.gmra.mxu0 %vm64_vm0, %v1832_v46  ;;  %1993 = vmatpush.msrb.mxu1 %v2196_v42 }
 0xc33   :  { %1994 = vmatpush.msrb.mxu1 %v2195_v43 }
 0xc35   :  { %1995 = vmatpush.msrb.mxu1 %v2194_v44 }
 0xca6   :  { %v1859_v49 = vpop.f32.mrf.mxu0 }
 0xca7   :  { %v1860_v51 = vadd.f32 %v2290_v48, %v1859_v49 }
 0xca9   :  { %v1865_v54 = vadd.f32 %v1860_v51, %v2882_v58 }
 0xcab   :  { %v1867_v53 = vsel %vm64_vm0, %v1865_v54, 0.0 }
 0xcac   :  { %1868 = vadd.xlane.f32.xlu0 %v1867_v53 }
 0xcae   :  { %v1862_v56 = vpop.f32.mrf.mxu0 }
 0xcaf   :  { %v1863_v61 = vadd.f32 %v2290_v48, %v1862_v56 }
 0xcb1   :  { %v1866_v12 = vadd.f32 %v1863_v61, %v2886_v25  ;;  %v2192_v25 = vld [vmem:[%s3223_s10 + $0x38] sm:$0xff] }
 0xcb2   :  { %1942 = vmatpush.msrb.mxu3 %v2192_v25  ;;  %v2294_v25 = vld [vmem:[%s3226_s13 + $0x1] ss:$0 sm:$0xff] }
 0xcb3   :  { %v1870_v18 = vsel %vm64_vm0, %v1866_v12, 0.0 }
 0xcb4   :  { %1871 = vadd.xlane.f32.xlu1 %v1870_v18  ;;  %1943 = vmatpush.msrb.mxu3 %v2191_v3 }
 0xcb6   :  { %1944 = vmatpush.msrb.mxu3 %v2190_v4 }
 0xcb8   :  { %1945 = vmatpush.msrb.mxu3 %v2189_v6 }
 0xd1f   :  { %v1869_v62 = vpop.xlane.xlu0 %1868 }
 0xd20   :  { %v1873_v60 = vmul.f32 %v1869_v62, %v2543_v10 }
 0xd22   :  { %v1875_v2 = vsub.f32 %v1865_v54, %v1873_v60 }
 0xd24   :  { %v1877_v59 = vmul.f32 %v1875_v2, %v1875_v2 }
 0xd26   :  { %v1879_v47 = vsel %vm64_vm0, %v1877_v59, 0.0 }
 0xd27   :  { %1880 = vadd.xlane.f32.xlu2 %v1879_v47  ;;  %v1872_v0 = vpop.xlane.xlu1 %1871 }
 0xd28   :  { %v1874_v58 = vmul.f32 %v1872_v0, %v2543_v10 }
 0xd2a   :  { %v1876_v50 = vsub.f32 %v1866_v12, %v1874_v58 }
 0xd2c   :  { %v1878_v7 = vmul.f32 %v1876_v50, %v1876_v50 }
 0xd2e   :  { %v1882_v15 = vsel %vm64_vm0, %v1878_v7, 0.0 }
 0xd2f   :  { %1883 = vadd.xlane.f32.xlu0 %v1882_v15 }
 0xd9a   :  { %v1881_v1 = vpop.xlane.xlu2 %1880 }
 0xd9b   :  { %v1885_v8 = vmul.f32 %v1881_v1, %v2543_v10 }
 0xd9d   :  { %v1887_v13 = vadd.f32 1e-05, %v1885_v8 }
 0xd9f   :  { %2380 = vrsqrt.f32 %v1887_v13  ;;  %vm1895_vm13 = vweird.f32 %v1887_v13 }
 0xda2   :  { %v1884_v14 = vpop.xlane.xlu0 %1883 }
 0xda3   :  { %v1886_v16 = vmul.f32 %v1884_v14, %v2543_v10 }
 0xda5   :  { %v2381_v17 = vpop.eup %2380  ;;  %v1888_v20 = vadd.f32 1e-05, %v1886_v16 }
 0xda6   :  { %v1890_v63 = vmul.f32 %v2381_v17, %v1887_v13  ;;  %vm1896_vm8 = vweird.f32 %v2381_v17 }
 0xda7   :  { %2382 = vrsqrt.f32 %v1888_v20  ;;  %vm1897_vm14 = vmor %vm1895_vm13, %vm1896_vm8  ;;  %vm1905_vm1 = vweird.f32 %v1888_v20 }
 0xda8   :  { %v1891_v5 = vmul.f32 %v2381_v17, %v1890_v63 }
 0xdaa   :  { %v1892_v24 = vmul.f32 0.5, %v1891_v5 }
 0xdac   :  { %v1893_v52 = vsub.f32 1.5, %v1892_v24 }
 0xdad   :  { %v2383_v26 = vpop.eup %2382 }
 0xdae   :  { %v1894_v27 = vmul.f32 %v2381_v17, %v1893_v52  ;;  %v1900_v31 = vmul.f32 %v2383_v26, %v1888_v20  ;;  %vm1906_vm15 = vweird.f32 %v2383_v26 }
 0xdaf   :  { %vm1907_vm2 = vmor %vm1905_vm1, %vm1906_vm15 }
 0xdb0   :  { %v1898_v19 = vsel %vm1897_vm14, %v2381_v17, %v1894_v27  ;;  %v1901_v30 = vmul.f32 %v2383_v26, %v1900_v31 }
 0xdb1   :  { %v1909_v23 = vmul.f32 %v1898_v19, %v1875_v2 }
 0xdb2   :  { %v1902_v33 = vmul.f32 0.5, %v1901_v30 }
 0xdb3   :  { %v1914_v34 = vmul.f32 %v2291_v9, %v1909_v23  ;;  %v2062_v23 = vld [vmem:[%s3229_s16 + $0x18] sm:$0xff] }
 0xdb4   :  { %v1903_v32 = vsub.f32 1.5, %v1902_v33  ;;  %2086 = vmatpush.msrb.mxu2 %v2062_v23 }
 0xdb5   :  { %v1919_v22 = vadd.f32 %v2292_v21, %v1914_v34  ;;  %v2060_v34 = vld [vmem:[%s3229_s16 + $0x8] sm:$0xff] }
 0xdb6   :  { %v1904_v28 = vmul.f32 %v2383_v26, %v1903_v32  ;;  %v2059_v32 = vld [vmem:[%s3229_s16] sm:$0xff] }
 0xdb7   :  { %2233 = vmatmul.msk.f32.vlgmr.msrb.gmra.mxu3 %vm64_vm0, %v1919_v22 }
 0xdb8   :  { %v1908_v29 = vsel %vm1907_vm2, %v2383_v26, %v1904_v28 }
 0xdb9   :  { %v1910_v35 = vmul.f32 %v1908_v29, %v1876_v50 }
 0xdbb   :  { %v1915_v36 = vmul.f32 %v2291_v9, %v1910_v35 }
 0xdbd   :  { %v1920_v37 = vadd.f32 %v2292_v21, %v1915_v36  ;;  %v2061_v21 = vld [vmem:[%s3229_s16 + $0x10] sm:$0xff] }
 0xdbe   :  { %2087 = vmatpush.msrb.mxu2 %v2061_v21 }
 0xdbf   :  { %2234 = vmatmul.msk.f32.gmra.mxu3 %vm64_vm0, %v1920_v37 }
 0xdc0   :  { %2088 = vmatpush.msrb.mxu2 %v2060_v34 }
 0xdc2   :  { %2089 = vmatpush.msrb.mxu2 %v2059_v32 }
 0xe3a   :  { %v1947_v55 = vpop.f32.mrf.mxu3 }
 0xe3b   :  { %v1948_v45 = vadd.f32 %v2293_v57, %v1947_v55 }
 0xe3d   :  { %v1955_v46 = vmul.f32 0.044715, %v1948_v45  ;;  %v1953_v59 = vmul.f32 0.5, %v1948_v45 }
 0xe3f   :  { %v1957_v48 = vmul.f32 %v1955_v46, %v1948_v45 }
 0xe41   :  { %v1959_v49 = vmul.f32 %v1957_v48, %v1948_v45 }
 0xe42   :  { %v1950_v51 = vpop.f32.mrf.mxu3 }
 0xe43   :  { %v1961_v54 = vadd.f32 %v1959_v49, %v1948_v45  ;;  %v1951_v53 = vadd.f32 %v2293_v57, %v1950_v51 }
 0xe45   :  { %v1963_v56 = vmul.f32 0.7978846, %v1961_v54  ;;  %v1956_v61 = vmul.f32 0.044715, %v1951_v53  ;;  %v1954_v50 = vmul.f32 0.5, %v1951_v53 }
 0xe46   :  { %v2296_v54 = vld [vmem:[%s3228_s15 + $0x1] ss:$0 sm:$0xff] }
 0xe47   :  { %2384 = vtanh.f32 %v1963_v56  ;;  %v1958_v12 = vmul.f32 %v1956_v61, %v1951_v53 }
 0xe49   :  { %v1960_v18 = vmul.f32 %v1958_v12, %v1951_v53 }
 0xe4b   :  { %v1962_v62 = vadd.f32 %v1960_v18, %v1951_v53  ;;  %v2297_v18 = vld [vmem:[%s3230_s17] ss:$0 sm:$0xff] }
 0xe4d   :  { %v2385_v60 = vpop.eup %2384  ;;  %v1964_v2 = vmul.f32 0.7978846, %v1962_v62 }
 0xe4e   :  { %v1967_v47 = vadd.f32 1.0, %v2385_v60 }
 0xe4f   :  { %2386 = vtanh.f32 %v1964_v2 }
 0xe50   :  { %v1969_v0 = vmul.f32 %v1967_v47, %v1953_v59 }
 0xe52   :  { %2235 = vmatmul.msk.f32.vlgmr.msrb.gmra.mxu1 %vm1007_vm6, %v1969_v0 }
 0xe55   :  { %v2387_v58 = vpop.eup %2386 }
 0xe56   :  { %v1968_v7 = vadd.f32 1.0, %v2387_v58 }
 0xe58   :  { %v1970_v15 = vmul.f32 %v1968_v7, %v1954_v50 }
 0xe5a   :  { %2236 = vmatmul.msk.f32.gmra.mxu1 %vm1007_vm6, %v1970_v15 }
 0xecf   :  { %v1997_v3 = vpop.f32.mrf.mxu1 }
 0xed0   :  { %v1998_v4 = vadd.f32 %v2294_v25, %v1997_v3 }
 0xed2   :  { %v2003_v6 = vadd.f32 %v1998_v4, %v1919_v22 }
 0xed4   :  { %v2005_v1 = vsel %vm64_vm0, %v2003_v6, 0.0 }
 0xed5   :  { %2006 = vadd.xlane.f32.xlu2 %v2005_v1 }
 0xed7   :  { %v2000_v8 = vpop.f32.mrf.mxu1 }
 0xed8   :  { %v2001_v13 = vadd.f32 %v2294_v25, %v2000_v8 }
 0xeda   :  { %v2004_v14 = vadd.f32 %v2001_v13, %v1920_v37 }
 0xedc   :  { %v2008_v16 = vsel %vm64_vm0, %v2004_v14, 0.0 }
 0xedd   :  { %2009 = vadd.xlane.f32.xlu1 %v2008_v16 }
 0xf48   :  { %v2007_v17 = vpop.xlane.xlu2 %2006 }
 0xf49   :  { %v2011_v20 = vmul.f32 %v2007_v17, %v2543_v10 }
 0xf4b   :  { %v2013_v63 = vsub.f32 %v2003_v6, %v2011_v20 }
 0xf4d   :  { %v2015_v5 = vmul.f32 %v2013_v63, %v2013_v63 }
 0xf4f   :  { %v2017_v24 = vsel %vm64_vm0, %v2015_v5, 0.0 }
 0xf50   :  { %v2010_v52 = vpop.xlane.xlu1 %2009  ;;  %2018 = vadd.xlane.f32.xlu1 %v2017_v24 }
 0xf51   :  { %v2012_v26 = vmul.f32 %v2010_v52, %v2543_v10 }
 0xf53   :  { %v2014_v27 = vsub.f32 %v2004_v14, %v2012_v26 }
 0xf55   :  { %v2016_v31 = vmul.f32 %v2014_v27, %v2014_v27 }
 0xf57   :  { %v2020_v9 = vsel %vm64_vm0, %v2016_v31, 0.0 }
 0xf58   :  { %2021 = vadd.xlane.f32.xlu0 %v2020_v9 }
 0xfc3   :  { %v2019_v19 = vpop.xlane.xlu1 %2018 }
 0xfc4   :  { %v2023_v30 = vmul.f32 %v2019_v19, %v2543_v10 }
 0xfc6   :  { %v2025_v33 = vadd.f32 1e-05, %v2023_v30 }
 0xfc8   :  { %2388 = vrsqrt.f32 %v2025_v33  ;;  %vm2033_vm3 = vweird.f32 %v2025_v33 }
 0xfcb   :  { %v2022_v22 = vpop.xlane.xlu0 %2021 }
 0xfcc   :  { %v2024_v28 = vmul.f32 %v2022_v22, %v2543_v10  ;;  %v2295_v10 = vld [vmem:[%s3227_s14 + $0x1] ss:$0 sm:$0xff]  ;;  %s2439_s14 = smov [#allocation2]  }
 0xfcd   :  { %s2134_s15 = sshll.u32 %s2439_s14, 4  ;;  %s2135_s15 = int_to_ptr.vmem [resolvable:$true] %s2134_s15 }
 0xfce   :  { %v2389_v29 = vpop.eup %2388  ;;  %v2026_v35 = vadd.f32 1e-05, %v2024_v28 }
 0xfcf   :  { %v2028_v36 = vmul.f32 %v2389_v29, %v2025_v33  ;;  %vm2034_vm6 = vweird.f32 %v2389_v29 }
 0xfd0   :  { %2390 = vrsqrt.f32 %v2026_v35  ;;  %vm2035_vm4 = vmor %vm2033_vm3, %vm2034_vm6  ;;  %vm2043_vm7 = vweird.f32 %v2026_v35 }
 0xfd1   :  { %v2029_v37 = vmul.f32 %v2389_v29, %v2028_v36 }
 0xfd3   :  { %v2030_v38 = vmul.f32 0.5, %v2029_v37 }
 0xfd5   :  { %v2031_v39 = vsub.f32 1.5, %v2030_v38 }
 0xfd6   :  { %v2391_v11 = vpop.eup %2390 }
 0xfd7   :  { %v2038_v40 = vmul.f32 %v2391_v11, %v2026_v35  ;;  %v2032_v41 = vmul.f32 %v2389_v29, %v2031_v39  ;;  %vm2044_vm5 = vweird.f32 %v2391_v11 }
 0xfd8   :  { %vm2045_vm9 = vmor %vm2043_vm7, %vm2044_vm5 }
 0xfd9   :  { %v2039_v42 = vmul.f32 %v2391_v11, %v2038_v40  ;;  %v2036_v44 = vsel %vm2035_vm4, %v2389_v29, %v2032_v41 }
 0xfda   :  { %v2047_v45 = vmul.f32 %v2036_v44, %v2013_v63 }
 0xfdb   :  { %v2040_v43 = vmul.f32 0.5, %v2039_v42 }
 0xfdc   :  { %v2052_v49 = vmul.f32 %v2295_v10, %v2047_v45 }
 0xfdd   :  { %v2041_v57 = vsub.f32 1.5, %v2040_v43 }
 0xfde   :  { %v2057_v56 = vadd.f32 %v2296_v54, %v2052_v49 }
 0xfdf   :  { %v2042_v55 = vmul.f32 %v2391_v11, %v2041_v57 }
 0xfe1   :  { %v2046_v46 = vsel %vm2045_vm9, %v2391_v11, %v2042_v55 }
 0xfe2   :  { %v2048_v48 = vmul.f32 %v2046_v46, %v2014_v27 }
 0xfe4   :  { %v2053_v51 = vmul.f32 %v2295_v10, %v2048_v48 }
 0xfe6   :  { %v2058_v53 = vadd.f32 %v2296_v54, %v2053_v51 }
 0xfe8   :  { %v2069_v61 = vrot.slane %v2058_v53, 7 }
 0xfea   :  { %v2071_v12 = vsel %vm2070_vm10, %v2069_v61, %v2057_v56 }
 0xfeb   :  { %2237 = vmatmul.msk.f32.vlgmr.msrb.gmra.mxu2 %vm64_vm0, %v2071_v12 }
0x106e   :  { %v2091_v62 = vpop.f32.mrf.mxu2 }
0x106f   :  { %v2092_v60 = vadd.f32 %v2297_v18, %v2091_v62 }
0x1071   :  { %2392 = vtanh.f32 %v2092_v60 }
0x1077   :  { %v2393_v2 = vpop.eup %2392 }
0x1078   :  { %v2095_v59 = vmul.f32 %v2393_v2, %v2393_v2 }
0x107a   :  { %v2097_v47 = vsel %vm2096_vm11, %v2095_v59, 0.0 }
0x107b   :  { %2098 = vadd.xlane.f32.xlu2 %v2097_v47 }
0x10ee   :  { %v2099_v0 = vpop.xlane.xlu2 %2098 }
0x10ef   :  { %2394 = vrsqrt.f32 %v2099_v0  ;;  %vm2107_vm0 = vcmp.eq.f32.partialorder %v2099_v0, inf  ;;  %v2110_v6 = vand.u32 2147483648, %v2099_v0  ;;  %vm2109_vm12 = vcmp.eq.f32.partialorder %v2099_v0, 0.0 }
0x10f5   :  { %v2395_v58 = vpop.eup %2394 }
0x10f6   :  { %v2101_v50 = vmul.f32 %v2395_v58, %v2099_v0 }
0x10f8   :  { %v2102_v7 = vmul.f32 %v2395_v58, %v2101_v50 }
0x10fa   :  { %v2103_v15 = vmul.f32 0.5, %v2102_v7 }
0x10fc   :  { %v2104_v25 = vsub.f32 1.5, %v2103_v15 }
0x10fe   :  { %v2105_v3 = vmul.f32 %v2395_v58, %v2104_v25 }
0x1100   :  { %v2106_v4 = vmul.f32 %v2105_v3, %v2099_v0 }
0x1102   :  { %v2108_v1 = vsel %vm2107_vm0, %v2099_v0, %v2106_v4 }
0x1103   :  { %v2111_v8 = vsel %vm2109_vm12, %v2110_v6, %v2108_v1 }
0x1104   :  { %v2112_v13 = vmax.f32 %v2111_v8, 1e-12 }
0x1106   :  { %2396 = vrcp.f32 %v2112_v13  ;;  %v2124_v20 = vand.u32 2147483648, %v2112_v13  ;;  %v2122_v5 = vand.u32 2147483647, %v2112_v13  ;;  %vm2118_vm13 = vweird.f32 %v2112_v13 }
0x1108   :  { %v2125_v52 = vor.u32 1.1754944e-38, %v2124_v20  ;;  %vm2123_vm15 = vcmp.eq.f32.partialorder %v2122_v5, 8.507059e+37 }
0x110c   :  { %v2397_v14 = vpop.eup %2396 }
0x110d   :  { %v2114_v16 = vmul.f32 %v2397_v14, %v2112_v13  ;;  %vm2119_vm8 = vweird.f32 %v2397_v14 }
0x110e   :  { %vm2120_vm14 = vmor %vm2118_vm13, %vm2119_vm8 }
0x110f   :  { %v2115_v17 = vsub.f32 1.0, %v2114_v16 }
0x1111   :  { %v2116_v63 = vmul.f32 %v2397_v14, %v2115_v17 }
0x1113   :  { %v2117_v24 = vadd.f32 %v2397_v14, %v2116_v63 }
0x1115   :  { %v2121_v26 = vsel %vm2120_vm14, %v2397_v14, %v2117_v24 }
0x1116   :  { %v2126_v27 = vsel %vm2123_vm15, %v2125_v52, %v2121_v26 }
0x1117   :  { %v2127_v31 = vmul.f32 %v2393_v2, %v2126_v27 }
0x1119   :  { %2128 = vst.msk [vmem:[#allocation2] sm:$0x3] %vm2096_vm11, %v2127_v31 }
0x111a   :  { %2139 = dma.vmem_to_hbm [thread:$0]  %s2135_s15, 32, %s2137_s24, [#allocation3]  }
0x111b   :  { %2422 = dma.done.wait [#allocation3], 32  }
0x111c   :  { %2423 = vsyncadd [#allocation3], 4294967264 }
0x111d   :  { %2144 = vsyncpa [#allocation3], 1 }

</bundles_post_ra>
